<compile_context>
chip_gen: v6e
topology: v6e:2x2x1
jax: 0.10.0
libtpu: 0.0.40
codegen_flags: <defaults>
</compile_context>

<pallas_src>
import functools

import jax
import jax.numpy as jnp
from jax.experimental import pallas as pl
from jax.experimental.pallas import tpu as pltpu


def _round_up(x, m):
    return (x + m - 1) // m * m


def _vmem_limit_bytes():
    """Generation-aware VMEM budget (~85% of physical, clamped)."""
    try:
        cap = pltpu.get_tpu_info().vmem_capacity_bytes
        return max(32 * 1024 * 1024, min(int(cap * 0.85), 128 * 1024 * 1024))
    except Exception:  # hardware query unavailable -> conservative default
        return 48 * 1024 * 1024


def _conv_bn_relu_kernel(x_ref, w_ref, shift_ref, o_ref, col_ref, *,
                         kh_size, kw_size, row_tile, wo_t, stride, cin_p):
    """One (batch, row-tile, cout-tile) grid step.

    x_ref:     (1, Hpp, Wpp, S*S*Cin_p)  phase-folded padded image (per batch)
    w_ref:     (KH*KW*Cin_p, Cout_t)     im2col weights with BN scale folded in
    shift_ref: (1, Cout_t)               folded BN shift (f32)
    o_ref:     (1, row_tile, Wo_t, Cout_t)
    col_ref:   (row_tile, Wo_t, KH*KW*Cin_p) VMEM scratch (im2col columns)
    """
    r = pl.program_id(1)
    co = pl.program_id(2)

    # Build the im2col columns once per (batch, row-tile); the cout axis is
    # innermost + "arbitrary", so the scratch is reused across all cout tiles.
    @pl.when(co == 0)
    def _build_columns():
        row0 = pl.multiple_of(r * row_tile, 8)   # output-row units (stride=1
        for kh in range(kh_size):                # after space-to-batch)
            for kw in range(kw_size):
                t = kh * kw_size + kw
                ph = (kh % stride) * stride + (kw % stride)
                patch = x_ref[0,
                              pl.ds(row0 + kh // stride, row_tile),
                              pl.ds(kw // stride, wo_t),
                              ph * cin_p:(ph + 1) * cin_p]
                col_ref[:, :, t * cin_p:(t + 1) * cin_p] = patch

    # One MXU contraction over K = KH*KW*Cin_p, f32 accumulation.
    acc = jnp.einsum("hwc,cf->hwf", col_ref[...], w_ref[...],
                     preferred_element_type=jnp.float32)

    # Epilogue: BN scale already folded into the weights; add shift + ReLU.
    y = jnp.maximum(acc + shift_ref[0], 0.0)
    o_ref[0] = y.astype(o_ref.dtype)


def conv_block_forward_nhwc(x_nhwc, w_oihw, gamma, beta, running_mean,
                            running_var, *, stride=1, eps=1e-5, row_tile=16,
                            cout_tile=None, compute_dtype=None):
    """relu(batchnorm(conv2d(x)))  —  NHWC in, NHWC out."""
    n, h, w, cin = x_nhwc.shape
    cout, cin_w, kh, kw = w_oihw.shape
    assert cin == cin_w, "groups != 1 not supported"

    out_dtype = x_nhwc.dtype
    cdt = jnp.dtype(compute_dtype) if compute_dtype is not None else jnp.dtype(out_dtype)

    s = int(stride)
    p_h, p_w = kh // 2, kw // 2
    ho = (h + 2 * p_h - kh) // s + 1
    wo = (w + 2 * p_w - kw) // s + 1

    # ---- channel / spatial tiling -----------------------------------------
    cin_p = _round_up(cin, 128)
    if cout_tile is None:
        # 256 matches the v6e/v7x MXU width; fall back to 128 (v5e: pass 128).
        cout_tile = 256 if _round_up(cout, 128) % 256 == 0 else 128
    cout_p = _round_up(cout, cout_tile)
    n_co = cout_p // cout_tile

    row_tile = max(8, min(_round_up(row_tile, 8), _round_up(ho, 8)))
    ho_p = _round_up(ho, row_tile)
    n_r = ho_p // row_tile
    wo_p = _round_up(wo, 8)

    # Per-phase (space-to-batch) padded extents needed by the kernel.
    halo_h = (kh - 1) // s
    halo_w = (kw - 1) // s
    hpp = max(ho_p + halo_h, -(-(h + p_h) // s))
    wpp = _round_up(max(wo_p + halo_w, -(-(w + p_w) // s)), 8)
    hp, wp = hpp * s, wpp * s

    # ---- wrapper glue: pad, phase-fold, BN fold (plain JAX) ----------------
    x = x_nhwc.astype(cdt)
    x = jnp.pad(x, ((0, 0),
                    (p_h, hp - h - p_h),
                    (p_w, wp - w - p_w),
                    (0, cin_p - cin)))
    # Space-to-batch: fold the s*s phases into the channel dim so the kernel
    # always runs stride-1 with dense, lane-aligned loads.
    x = x.reshape(n, hpp, s, wpp, s, cin_p)
    x = jnp.transpose(x, (0, 1, 3, 2, 4, 5))
    x = x.reshape(n, hpp, wpp, s * s * cin_p)

    scale = gamma / jnp.sqrt(running_var + eps)            # (Cout,)
    shift = beta - running_mean * scale
    w_hwio = jnp.transpose(w_oihw, (2, 3, 1, 0)).astype(jnp.float32)
    w_hwio = w_hwio * scale[None, None, None, :]            # fold BN scale (f32)
    w_hwio = jnp.pad(w_hwio, ((0, 0), (0, 0),
                              (0, cin_p - cin), (0, cout_p - cout)))
    k_dim = kh * kw * cin_p
    w_mat = w_hwio.reshape(k_dim, cout_p).astype(cdt)
    shift_p = jnp.pad(shift, (0, cout_p - cout)).reshape(1, cout_p).astype(jnp.float32)

    kernel = functools.partial(_conv_bn_relu_kernel,
                               kh_size=kh, kw_size=kw, row_tile=row_tile,
                               wo_t=wo_p, stride=s, cin_p=cin_p)

    itemsize = jnp.dtype(cdt).itemsize
    steps = n * n_r * n_co
    flops = 2 * n * ho_p * wo_p * cout_p * k_dim
    bytes_accessed = (n * hpp * wpp * (s * s * cin_p) * itemsize   # image: 1x / batch
                      + steps * k_dim * cout_tile * itemsize       # weights: every step
                      + steps * cout_tile * 4                      # shift: every step
                      + n * ho_p * wo_p * cout_p * jnp.dtype(out_dtype).itemsize)

    out_nhwc = pl.pallas_call(
        kernel,
        out_shape=jax.ShapeDtypeStruct((n, ho_p, wo_p, cout_p), out_dtype),
        grid_spec=pltpu.PrefetchScalarGridSpec(
            num_scalar_prefetch=0,
            grid=(n, n_r, n_co),
            in_specs=[
                # Full phase-folded image; block index depends only on b ->
                # DMA'd once per batch element, resident across row/cout tiles.
                pl.BlockSpec((1, hpp, wpp, s * s * cin_p),
                             lambda b, r, co: (b, 0, 0, 0)),
                pl.BlockSpec((k_dim, cout_tile), lambda b, r, co: (0, co)),
                pl.BlockSpec((1, cout_tile), lambda b, r, co: (0, co)),
            ],
            out_specs=pl.BlockSpec((1, row_tile, wo_p, cout_tile),
                                   lambda b, r, co: (b, r, 0, co)),
            scratch_shapes=[
                pltpu.VMEM((row_tile, wo_p, k_dim), cdt),
            ]),
        compiler_params=pltpu.CompilerParams(
            # cout axis must be sequential ("arbitrary") so the im2col scratch
            # built at co == 0 is valid for the remaining cout tiles.
            dimension_semantics=("parallel", "parallel", "arbitrary"),
            vmem_limit_bytes=_vmem_limit_bytes()),
        cost_estimate=pl.CostEstimate(flops=flops, transcendentals=0,
                                      bytes_accessed=bytes_accessed),
    )(x, w_mat, shift_p)

    return out_nhwc[:, :ho, :wo, :cout]


def conv_block_forward(x_nchw, w_oihw, gamma, beta, running_mean, running_var,
                       *, stride=1, eps=1e-5, row_tile=16, cout_tile=None,
                       compute_dtype=None):
    """ConvBlock forward with the PyTorch NCHW interface."""
    x_nhwc = jnp.transpose(x_nchw, (0, 2, 3, 1))
    y = conv_block_forward_nhwc(x_nhwc, w_oihw, gamma, beta, running_mean,
                                running_var, stride=stride, eps=eps,
                                row_tile=row_tile, cout_tile=cout_tile,
                                compute_dtype=compute_dtype)
    return jnp.transpose(y, (0, 3, 1, 2))


def _reference(x_nchw, w_oihw, gamma, beta, running_mean, running_var,
               *, stride=1, eps=1e-5):
    p = w_oihw.shape[2] // 2
    y = jax.lax.conv_general_dilated(
        x_nchw.astype(jnp.float32), w_oihw.astype(jnp.float32),
        window_strides=(stride, stride), padding=((p, p), (p, p)),
        dimension_numbers=("NCHW", "OIHW", "NCHW"))
    scale = gamma / jnp.sqrt(running_var + eps)
    shift = beta - running_mean * scale
    y = y * scale.reshape(1, -1, 1, 1) + shift.reshape(1, -1, 1, 1)
    return jnp.maximum(y, 0.0)


if __name__ == "__main__":
    key = jax.random.PRNGKey(0)
    keys = jax.random.split(key, 11)

    N, CIN, H, W, K = 2, 4, 16, 16, 3
    COUT_A = 8      # single cout tile
    COUT_B = 200    # with cout_tile=128 -> 2 cout tiles (exercises im2col reuse)

    x = jax.random.normal(keys[0], (N, CIN, H, W), jnp.float32)

    w_a = jax.random.normal(keys[1], (COUT_A, CIN, K, K), jnp.float32) * 0.1
    g_a = 1.0 + 0.1 * jax.random.normal(keys[2], (COUT_A,), jnp.float32)
    b_a = 0.1 * jax.random.normal(keys[3], (COUT_A,), jnp.float32)
    m_a = 0.1 * jax.random.normal(keys[4], (COUT_A,), jnp.float32)
    v_a = jnp.abs(jax.random.normal(keys[5], (COUT_A,), jnp.float32)) + 0.5

    w_b = jax.random.normal(keys[6], (COUT_B, CIN, K, K), jnp.float32) * 0.1
    g_b = 1.0 + 0.1 * jax.random.normal(keys[7], (COUT_B,), jnp.float32)
    b_b = 0.1 * jax.random.normal(keys[8], (COUT_B,), jnp.float32)
    m_b = 0.1 * jax.random.normal(keys[9], (COUT_B,), jnp.float32)
    v_b = jnp.abs(jax.random.normal(keys[10], (COUT_B,), jnp.float32)) + 0.5

    # 1) stride=1, f32 operands (tight tolerance).
    out1 = jax.block_until_ready(
        conv_block_forward(x, w_a, g_a, b_a, m_a, v_a, stride=1))
    ref1 = _reference(x, w_a, g_a, b_a, m_a, v_a, stride=1)
    assert out1.shape == (N, COUT_A, H, W), out1.shape
    assert jnp.allclose(out1, ref1, atol=1e-3, rtol=1e-3), float(
        jnp.max(jnp.abs(out1 - ref1)))

    # 2) stride=2 (space-to-batch path) + two cout tiles (im2col reuse), f32.
    out2 = jax.block_until_ready(
        conv_block_forward(x, w_b, g_b, b_b, m_b, v_b, stride=2, cout_tile=128))
    ref2 = _reference(x, w_b, g_b, b_b, m_b, v_b, stride=2)
    assert out2.shape == ref2.shape, (out2.shape, ref2.shape)
    assert jnp.allclose(out2, ref2, atol=1e-3, rtol=1e-3), float(
        jnp.max(jnp.abs(out2 - ref2)))

    # 3) bf16 MXU operands with f32 accumulation (looser tolerance).
    out3 = jax.block_until_ready(
        conv_block_forward(x, w_a, g_a, b_a, m_a, v_a, stride=1,
                           compute_dtype=jnp.bfloat16))
    assert jnp.allclose(out3, ref1, atol=5e-2, rtol=5e-2), float(
        jnp.max(jnp.abs(out3 - ref1)))

    print("KERNEL_OK")
</pallas_src>

<mosaic_0001>
module attributes {stable_mosaic.version = 11 : i64} {
  func.func @_conv_bn_relu_kernel(%arg0: i32, %arg1: i32, %arg2: i32, %arg3: memref<1x18x24x128xf32, #tpu.memory_space<vmem>>, %arg4: memref<1152x128xf32, #tpu.memory_space<vmem>>, %arg5: memref<1x128xf32, #tpu.memory_space<vmem>>, %arg6: memref<1x16x16x128xf32, #tpu.memory_space<vmem>>, %arg7: memref<16x16x1152xf32, #tpu.memory_space<vmem>>) attributes {dimension_semantics = [#tpu.dimension_semantics<parallel>, #tpu.dimension_semantics<parallel>, #tpu.dimension_semantics<arbitrary>], iteration_bounds = array<i64: 2, 1, 1>, scalar_prefetch = 0 : i64, scratch_operands = 1 : i64, tpu.core_type = #tpu.core_type<tc>, window_params = [{transform_indices = @transform_0, window_bounds = array<i64: 1, 18, 24, 128>}, {transform_indices = @transform_1, window_bounds = array<i64: 1152, 128>}, {transform_indices = @transform_2, window_bounds = array<i64: 1, 128>}, {transform_indices = @transform_3, window_bounds = array<i64: 1, 16, 16, 128>}]} {
    %c0_i32 = arith.constant 0 : i32
    %0 = arith.cmpi eq, %arg2, %c0_i32 : i32
    %1 = arith.extui %0 : i1 to i32
    %c0_i32_0 = arith.constant 0 : i32
    %2 = arith.cmpi ne, %1, %c0_i32_0 : i32
    scf.if %2 {
      %c16_i32 = arith.constant 16 : i32
      %16 = arith.muli %arg1, %c16_i32 : i32
      %17 = tpu.assume_multiple %16, 8 : i32
      %c0_i32_12 = arith.constant 0 : i32
      %18 = arith.addi %17, %c0_i32_12 : i32
      %c0_13 = arith.constant 0 : index
      %19 = arith.index_cast %18 : i32 to index
      %c0_14 = arith.constant 0 : index
      %c0_15 = arith.constant 0 : index
      %20 = vector.load %arg3[%c0_13, %19, %c0_14, %c0_15] : memref<1x18x24x128xf32, #tpu.memory_space<vmem>>, vector<1x16x16x128xf32>
      %21 = vector.shape_cast %20 : vector<1x16x16x128xf32> to vector<16x16x128xf32>
      %c0_16 = arith.constant 0 : index
      %c0_17 = arith.constant 0 : index
      %c0_18 = arith.constant 0 : index
      %22 = vector.load %arg7[%c0_16, %c0_17, %c0_18] : memref<16x16x1152xf32, #tpu.memory_space<vmem>>, vector<16x16x128xf32>
      tpu.vector_store %arg7[%c0_16, %c0_17, %c0_18], %21 {strides = array<i32>} : memref<16x16x1152xf32, #tpu.memory_space<vmem>>, vector<16x16x128xf32>,
      %c0_i32_19 = arith.constant 0 : i32
      %23 = arith.addi %17, %c0_i32_19 : i32
      %c0_20 = arith.constant 0 : index
      %24 = arith.index_cast %23 : i32 to index
      %c1 = arith.constant 1 : index
      %c0_21 = arith.constant 0 : index
      %25 = vector.load %arg3[%c0_20, %24, %c1, %c0_21] : memref<1x18x24x128xf32, #tpu.memory_space<vmem>>, vector<1x16x16x128xf32>
      %26 = vector.shape_cast %25 : vector<1x16x16x128xf32> to vector<16x16x128xf32>
      %c0_22 = arith.constant 0 : index
      %c0_23 = arith.constant 0 : index
      %c128 = arith.constant 128 : index
      %27 = vector.load %arg7[%c0_22, %c0_23, %c128] : memref<16x16x1152xf32, #tpu.memory_space<vmem>>, vector<16x16x128xf32>
      tpu.vector_store %arg7[%c0_22, %c0_23, %c128], %26 {strides = array<i32>} : memref<16x16x1152xf32, #tpu.memory_space<vmem>>, vector<16x16x128xf32>,
      %c0_i32_24 = arith.constant 0 : i32
      %28 = arith.addi %17, %c0_i32_24 : i32
      %c0_25 = arith.constant 0 : index
      %29 = arith.index_cast %28 : i32 to index
      %c2 = arith.constant 2 : index
      %c0_26 = arith.constant 0 : index
      %30 = vector.load %arg3[%c0_25, %29, %c2, %c0_26] : memref<1x18x24x128xf32, #tpu.memory_space<vmem>>, vector<1x16x16x128xf32>
      %31 = vector.shape_cast %30 : vector<1x16x16x128xf32> to vector<16x16x128xf32>
      %c0_27 = arith.constant 0 : index
      %c0_28 = arith.constant 0 : index
      %c256 = arith.constant 256 : index
      %32 = vector.load %arg7[%c0_27, %c0_28, %c256] : memref<16x16x1152xf32, #tpu.memory_space<vmem>>, vector<16x16x128xf32>
      tpu.vector_store %arg7[%c0_27, %c0_28, %c256], %31 {strides = array<i32>} : memref<16x16x1152xf32, #tpu.memory_space<vmem>>, vector<16x16x128xf32>,
      %c1_i32 = arith.constant 1 : i32
      %33 = arith.addi %17, %c1_i32 : i32
      %c0_29 = arith.constant 0 : index
      %34 = arith.index_cast %33 : i32 to index
      %c0_30 = arith.constant 0 : index
      %c0_31 = arith.constant 0 : index
      %35 = vector.load %arg3[%c0_29, %34, %c0_30, %c0_31] : memref<1x18x24x128xf32, #tpu.memory_space<vmem>>, vector<1x16x16x128xf32>
      %36 = vector.shape_cast %35 : vector<1x16x16x128xf32> to vector<16x16x128xf32>
      %c0_32 = arith.constant 0 : index
      %c0_33 = arith.constant 0 : index
      %c384 = arith.constant 384 : index
      %37 = vector.load %arg7[%c0_32, %c0_33, %c384] : memref<16x16x1152xf32, #tpu.memory_space<vmem>>, vector<16x16x128xf32>
      tpu.vector_store %arg7[%c0_32, %c0_33, %c384], %36 {strides = array<i32>} : memref<16x16x1152xf32, #tpu.memory_space<vmem>>, vector<16x16x128xf32>,
      %c1_i32_34 = arith.constant 1 : i32
      %38 = arith.addi %17, %c1_i32_34 : i32
      %c0_35 = arith.constant 0 : index
      %39 = arith.index_cast %38 : i32 to index
      %c1_36 = arith.constant 1 : index
      %c0_37 = arith.constant 0 : index
      %40 = vector.load %arg3[%c0_35, %39, %c1_36, %c0_37] : memref<1x18x24x128xf32, #tpu.memory_space<vmem>>, vector<1x16x16x128xf32>
      %41 = vector.shape_cast %40 : vector<1x16x16x128xf32> to vector<16x16x128xf32>
      %c0_38 = arith.constant 0 : index
      %c0_39 = arith.constant 0 : index
      %c512 = arith.constant 512 : index
      %42 = vector.load %arg7[%c0_38, %c0_39, %c512] : memref<16x16x1152xf32, #tpu.memory_space<vmem>>, vector<16x16x128xf32>
      tpu.vector_store %arg7[%c0_38, %c0_39, %c512], %41 {strides = array<i32>} : memref<16x16x1152xf32, #tpu.memory_space<vmem>>, vector<16x16x128xf32>,
      %c1_i32_40 = arith.constant 1 : i32
      %43 = arith.addi %17, %c1_i32_40 : i32
      %c0_41 = arith.constant 0 : index
      %44 = arith.index_cast %43 : i32 to index
      %c2_42 = arith.constant 2 : index
      %c0_43 = arith.constant 0 : index
      %45 = vector.load %arg3[%c0_41, %44, %c2_42, %c0_43] : memref<1x18x24x128xf32, #tpu.memory_space<vmem>>, vector<1x16x16x128xf32>
      %46 = vector.shape_cast %45 : vector<1x16x16x128xf32> to vector<16x16x128xf32>
      %c0_44 = arith.constant 0 : index
      %c0_45 = arith.constant 0 : index
      %c640 = arith.constant 640 : index
      %47 = vector.load %arg7[%c0_44, %c0_45, %c640] : memref<16x16x1152xf32, #tpu.memory_space<vmem>>, vector<16x16x128xf32>
      tpu.vector_store %arg7[%c0_44, %c0_45, %c640], %46 {strides = array<i32>} : memref<16x16x1152xf32, #tpu.memory_space<vmem>>, vector<16x16x128xf32>,
      %c2_i32 = arith.constant 2 : i32
      %48 = arith.addi %17, %c2_i32 : i32
      %c0_46 = arith.constant 0 : index
      %49 = arith.index_cast %48 : i32 to index
      %c0_47 = arith.constant 0 : index
      %c0_48 = arith.constant 0 : index
      %50 = vector.load %arg3[%c0_46, %49, %c0_47, %c0_48] : memref<1x18x24x128xf32, #tpu.memory_space<vmem>>, vector<1x16x16x128xf32>
      %51 = vector.shape_cast %50 : vector<1x16x16x128xf32> to vector<16x16x128xf32>
      %c0_49 = arith.constant 0 : index
      %c0_50 = arith.constant 0 : index
      %c768 = arith.constant 768 : index
      %52 = vector.load %arg7[%c0_49, %c0_50, %c768] : memref<16x16x1152xf32, #tpu.memory_space<vmem>>, vector<16x16x128xf32>
      tpu.vector_store %arg7[%c0_49, %c0_50, %c768], %51 {strides = array<i32>} : memref<16x16x1152xf32, #tpu.memory_space<vmem>>, vector<16x16x128xf32>,
      %c2_i32_51 = arith.constant 2 : i32
      %53 = arith.addi %17, %c2_i32_51 : i32
      %c0_52 = arith.constant 0 : index
      %54 = arith.index_cast %53 : i32 to index
      %c1_53 = arith.constant 1 : index
      %c0_54 = arith.constant 0 : index
      %55 = vector.load %arg3[%c0_52, %54, %c1_53, %c0_54] : memref<1x18x24x128xf32, #tpu.memory_space<vmem>>, vector<1x16x16x128xf32>
      %56 = vector.shape_cast %55 : vector<1x16x16x128xf32> to vector<16x16x128xf32>
      %c0_55 = arith.constant 0 : index
      %c0_56 = arith.constant 0 : index
      %c896 = arith.constant 896 : index
      %57 = vector.load %arg7[%c0_55, %c0_56, %c896] : memref<16x16x1152xf32, #tpu.memory_space<vmem>>, vector<16x16x128xf32>
      tpu.vector_store %arg7[%c0_55, %c0_56, %c896], %56 {strides = array<i32>} : memref<16x16x1152xf32, #tpu.memory_space<vmem>>, vector<16x16x128xf32>,
      %c2_i32_57 = arith.constant 2 : i32
      %58 = arith.addi %17, %c2_i32_57 : i32
      %c0_58 = arith.constant 0 : index
      %59 = arith.index_cast %58 : i32 to index
      %c2_59 = arith.constant 2 : index
      %c0_60 = arith.constant 0 : index
      %60 = vector.load %arg3[%c0_58, %59, %c2_59, %c0_60] : memref<1x18x24x128xf32, #tpu.memory_space<vmem>>, vector<1x16x16x128xf32>
      %61 = vector.shape_cast %60 : vector<1x16x16x128xf32> to vector<16x16x128xf32>
      %c0_61 = arith.constant 0 : index
      %c0_62 = arith.constant 0 : index
      %c1024 = arith.constant 1024 : index
      %62 = vector.load %arg7[%c0_61, %c0_62, %c1024] : memref<16x16x1152xf32, #tpu.memory_space<vmem>>, vector<16x16x128xf32>
      tpu.vector_store %arg7[%c0_61, %c0_62, %c1024], %61 {strides = array<i32>} : memref<16x16x1152xf32, #tpu.memory_space<vmem>>, vector<16x16x128xf32>,
    } else {
    }
    %c0 = arith.constant 0 : index
    %c0_1 = arith.constant 0 : index
    %c0_2 = arith.constant 0 : index
    %3 = vector.load %arg7[%c0, %c0_1, %c0_2] : memref<16x16x1152xf32, #tpu.memory_space<vmem>>, vector<16x16x1152xf32>
    %c0_3 = arith.constant 0 : index
    %c0_4 = arith.constant 0 : index
    %4 = vector.load %arg4[%c0_3, %c0_4] : memref<1152x128xf32, #tpu.memory_space<vmem>>, vector<1152x128xf32>
    "tpu.trace_start"() <{level = 10 : i32, message = "hwc,cf->hwf"}> : () -> ()
    %cst = arith.constant dense<0.000000e+00> : vector<16x16x128xf32>
    %5 = tpu.matmul %3, %4, %cst {dimension_numbers = #tpu.dot_dimension_numbers<[2], [0], [0, 1], [1], [0, 0, 0, 1, 1, 1], [], []>} : vector<16x16x1152xf32>, vector<1152x128xf32>, vector<16x16x128xf32> -> vector<16x16x128xf32>
    "tpu.trace_stop"() : () -> ()
    %c0_5 = arith.constant 0 : index
    %c0_6 = arith.constant 0 : index
    %6 = vector.load %arg5[%c0_5, %c0_6] : memref<1x128xf32, #tpu.memory_space<vmem>>, vector<1x128xf32>
    %7 = vector.shape_cast %6 : vector<1x128xf32> to vector<128xf32>
    %8 = vector.shape_cast %7 : vector<128xf32> to vector<1x1x128xf32>
    %9 = vector.broadcast %8 : vector<1x1x128xf32> to vector<16x16x128xf32>
    %10 = arith.addf %5, %9 : vector<16x16x128xf32>
    %cst_7 = arith.constant 0.000000e+00 : f32
    %11 = vector.broadcast %cst_7 : f32 to vector<16x16x128xf32>
    %12 = arith.maximumf %10, %11 : vector<16x16x128xf32>
    %c0_8 = arith.constant 0 : index
    %c0_9 = arith.constant 0 : index
    %c0_10 = arith.constant 0 : index
    %c0_11 = arith.constant 0 : index
    %13 = vector.load %arg6[%c0_8, %c0_9, %c0_10, %c0_11] : memref<1x16x16x128xf32, #tpu.memory_space<vmem>>, vector<1x16x16x128xf32>
    %14 = vector.shape_cast %13 : vector<1x16x16x128xf32> to vector<16x16x128xf32>
    %15 = vector.shape_cast %12 : vector<16x16x128xf32> to vector<1x16x16x128xf32>
    tpu.vector_store %arg6[%c0_8, %c0_9, %c0_10, %c0_11], %15 {strides = array<i32>} : memref<1x16x16x128xf32, #tpu.memory_space<vmem>>, vector<1x16x16x128xf32>,
    return
  }
  func.func @transform_0(%arg0: i32, %arg1: i32, %arg2: i32) -> (i32, i32, i32, i32) {
    %c0_i32 = arith.constant 0 : i32
    %c0_i32_0 = arith.constant 0 : i32
    %c0_i32_1 = arith.constant 0 : i32
    %c0_i32_2 = arith.constant 0 : i32
    return %arg0, %c0_i32, %c0_i32_0, %c0_i32_1 : i32, i32, i32, i32
  }
  func.func @transform_1(%arg0: i32, %arg1: i32, %arg2: i32) -> (i32, i32) {
    %c0_i32 = arith.constant 0 : i32
    %c0_i32_0 = arith.constant 0 : i32
    return %c0_i32, %arg2 : i32, i32
  }
  func.func @transform_2(%arg0: i32, %arg1: i32, %arg2: i32) -> (i32, i32) {
    %c0_i32 = arith.constant 0 : i32
    %c0_i32_0 = arith.constant 0 : i32
    return %c0_i32, %arg2 : i32, i32
  }
  func.func @transform_3(%arg0: i32, %arg1: i32, %arg2: i32) -> (i32, i32, i32, i32) {
    %c0_i32 = arith.constant 0 : i32
    %c0_i32_0 = arith.constant 0 : i32
    return %arg0, %arg1, %c0_i32, %arg2 : i32, i32, i32, i32
  }
}

</mosaic_0001>

<bundles_post_ra>
// kernel: tpu_custom_call.1
= control target key start
LH: loop header
LB: loop body
LE: loop exit
PB: predicated region body
PF: predicated region fallthrough
CT: control target
= control target key end

     0   :  { %8 = vsyncpa [#allocation4], 0  ;;  %s4387_s0 = inlined_call_operand.hbm [shape: f32[2,18,24,128], index: 0, kind: input, shape index: {}]   ;;  %s4388_s1 = inlined_call_operand.hbm [shape: f32[1152,128], index: 1, kind: input, shape index: {}]   ;;  %s4389_s2 = inlined_call_operand.vmem [shape: f32[1,128], index: 2, kind: input, shape index: {}]   ;;  %s4390_s3 = inlined_call_operand.hbm [shape: f32[2,16,16,128], index: 3, kind: output, shape index: {}]  }
   0x1   :  { %10 = vsyncpa [#allocation4 + $0x1], 0 }
   0x2   :  { %11 = vsyncpa [#allocation7], 0 }
   0x3   :  { %12 = vsyncpa [#allocation5], 0 }
   0x4   :  { %14 = vsyncpa [#allocation5 + $0x1], 0  ;;  %s3224_s12 = smov 0   ;;  %s3226_s13 = smov 0  }
   0x5   :  { %s3228_s14 = smov 0   ;;  %s3230_s15 = smov 0  }
   0x6   :  { %s3232_s16 = smov 0   ;;  %s3234_s17 = smov 0  }
   0x7 LB: > { %s2606_s18 = sadd.s32 4294967295, %s3194_s17   ;;  %s2607_s19 = sadd.s32 4294967294, %s3194_s17   ;;  %s3194_s17 = sphi %s3234_s17, %s20_s17   ;;  %s3190_s16 = sphi %s3232_s16, %s4535_s16   ;;  %s3186_s15 = sphi %s3230_s15, %s4534_s15   ;;  %s3182_s14 = sphi %s3228_s14, %s4533_s14   ;;  %s3178_s13 = sphi %s3226_s13, %s4532_s13   ;;  %s3174_s12 = sphi %s3224_s12, %s4531_s12  }
   0x8   : > { %p59_p0 = scmp.ne.s32.totalorder %s3178_s13, %s3174_s12  ;;  %p3258_p1 = scmp.eq.s32.totalorder %s2606_s18, 0 }
   0x9   : > { %p3262_p2 = scmp.eq.s32.totalorder %s2606_s18, 1  ;;  %p145_p3 = scmp.eq.s32.totalorder %s2607_s19, 1 }
   0xa   : > { %p3268_p4 = por %p3258_p1, %p59_p0  ;;  %p2608_p5 = scmp.ge.s32.totalorder %s3194_s17, 1 }
   0xb   : > { %p3273_p6 = por %p145_p3, %p59_p0  ;;  %p152_p7 = scmp.lt.s32.totalorder %s3194_s17, 3 }
   0xc   : > { %s4435_s22 = scalar_select %p3268_p4, 1, 0 }
   0xd   : > { %s4436_s23 = scalar_select %p3273_p6, 1, 0 }
   0xe   : > { %p3278_p8 = pnand %p2608_p5, %p152_p7  ;;  %s3196_s25 = smov [#allocation6]  }
   0xf   : > { %s166_s26 = sshll.u32 %s3196_s25, 4  ;;  %p2611_p10 = scmp.ge.s32.totalorder %s3194_s17, 2  ;;  %s167_s26 = int_to_ptr.vmem [resolvable:$true] %s166_s26 }
  0x10   : > { %p2986_p9 = pneg %p3278_p8  ;;  %s39_s28 = sadd.s32 1, %s3190_s16 }
  0x11   : > { %s3067_s29 = scalar_lea.vmem %s167_s26, 18432  ;;  %p3075_p5 = scmp.lt.s32.totalorder %s167_s26, %s167_s26 }
  0x12   : > { %p3287_p11 = pnand %p2986_p9, %p3258_p1  ;;  %p3068_p13 = scmp.ne.s32.totalorder %s167_s26, %s3067_s29 }
  0x13   : > { %p3076_p7 = scmp.lt.s32.totalorder %s3067_s29, %s3067_s29 }
  0x14   : > { %p3058_p12 = pneg %p3287_p11 }
  0x15   : > { %p3077_p6 = por %p3076_p7, %p3075_p5 }
  0x16   : > { %p3070_p0 = pnand %p3068_p13, %p3058_p12 }
  0x18   : > { %p3071_p3 = pneg %p3070_p0 }
  0x1a   : > { %p3078_p4 = pnand %p3077_p6, %p3071_p3 }
  0x1c   : > { %3081 = shalt.err (!%p3078_p4)
}
  0x1d   : > { %s3197_s30 = smov 128   ;;  %s3198_s4 = smov 8  }
  0x1e   : > { %2989 = dma.hbm_to_vmem [thread:$0]  (!%p3287_p11), %s4388_s1, 18432, %s167_s26, [#allocation7], %s3197_s30, %s3197_s30, %s3198_s4  }
  0x1f   : > { %p41_p4 = scmp.ge.s32.totalorder %s39_s28, 2  ;;  %s46_s7 = sadd.s32 1, %s3182_s14 }
  0x20   : > { %p53_p6 = scmp.ne.s32.totalorder %s3182_s14, %s3178_s13  ;;  %p54_p9 = scmp.eq.s32.totalorder %s3194_s17, 0 }
  0x21   : > { %s4537_s28 = smov (%p41_p4, %s39_s28), 0  ;;  %p2999_p0 = scmp.lt.s32.totalorder %s3194_s17, 2 }
  0x22   : > { %p55_p12 = por %p54_p9, %p53_p6  ;;  %p3310_p13 = por %p3262_p2, %p53_p6 }
  0x23   : > { %s43_s9 = ssub.s32 %s3190_s16, %s4537_s28  ;;  %s186_s10 = sand.u32 1, %s3182_s14  }
  0x24   : > { %p44_p3 = scmp.eq.s32.totalorder %s43_s9, 0  ;;  %s2975_s11 = smul.u32 432, %s186_s10 }
  0x25   : > { %s2976_s19 = smul.u32 6912, %s3190_s16  ;;  %p3322_p11 = pnand %p2999_p0, %p55_p12 }
  0x26   : > { %s3319_s18 = scalar_select %p44_p3, %s3182_s14, %s46_s7  }
  0x27   : > { %s190_s25 = scalar_lea.vmem [#allocation3], %s2975_s11  ;;  %s196_s5 = scalar_lea.hbm %s4387_s0, %s2976_s19 }
  0x28   : > { %s197_s26 = sshll.u32 %s190_s25, 4  ;;  %s187_s6 = scalar_lea.sflag [#allocation4], %s186_s10  ;;  %s198_s26 = int_to_ptr.vmem [resolvable:$true] %s197_s26 }
  0x29   : > { %p3084_p2 = pneg %p3322_p11  ;;  %s3095_s9 = scalar_lea.vmem %s198_s26, 6912 }
  0x2a   : > { %p3096_p5 = scmp.ne.s32.totalorder %s198_s26, %s3095_s9  ;;  %s3199_s7 = smov [#allocation3]  }
  0x2b   : > { %s3100_s11 = sshll.u32 %s3199_s7, 4  ;;  %s3101_s11 = int_to_ptr.vmem [resolvable:$false] %s3100_s11 }
  0x2c   : > { %p3098_p7 = pnand %p3096_p5, %p3084_p2  ;;  %s3102_s25 = scalar_lea.vmem %s3101_s11, 13824 }
  0x2d   : > { %p3103_p6 = scmp.lt.s32.totalorder %s198_s26, %s3101_s11  ;;  %p3104_p9 = scmp.lt.s32.totalorder %s3102_s25, %s3095_s9 }
  0x2e   : > { %p3099_p4 = pneg %p3098_p7 }
  0x2f   : > { %p3105_p12 = por %p3104_p9, %p3103_p6 }
  0x31   : > { %p3106_p0 = pnand %p3105_p12, %p3099_p4 }
  0x33   : > { %3109 = shalt.err (!%p3106_p0)
}
  0x34   : > { %2993 = dma.hbm_to_vmem [thread:$0]  (!%p3322_p11), %s196_s5, 6912, %s198_s26, %s187_s6, %s3197_s30, %s3197_s30, %s3198_s4  }
  0x35   : > { %209 = sbr.rel (%p3278_p8) target bundleno = 628 (0x274), region = 32 }
  0x3a   : > { %s3339_s10 = sand.u32 1, %s3178_s13   ;;  %p4441_p3 = scmp.ne.s32.totalorder %s4435_s22, 0 }
  0x3b   : > { %s2977_s19 = smul.u32 432, %s3339_s10  ;;  %s212_s29 = scalar_lea.sflag [#allocation4], %s3339_s10 }
  0x3d   : > { %s3343_s21 = scalar_lea.vmem [#allocation3], %s2977_s19 }
  0x3e   : > { %3161 = dma.done.wait (%p4441_p3), %s212_s29, 6912  }
  0x3f   : > { %3163 = vsyncadd (%p4441_p3), %s212_s29, 4294960384 }
  0x40   : > { %3165 = dma.done.wait (%p3258_p1), [#allocation7], 18432  }
  0x41   : > { %3167 = vsyncadd (%p3258_p1), [#allocation7], 4294948864  ;;  %v3200_v0 = vmov 0.0   ;;  %v1141_v1 = vld [vmem:[#allocation6 + $0x78] sm:$0xff]  ;;  %v1140_v3 = vld [vmem:[#allocation6 + $0x70] sm:$0xff]  ;;  %s2615_s24 = sshll.u32 %s3339_s10, 8 }
  0x42   : > { %1277 = vmatprep.subr.mxu0 %v3200_v0  ;;  %1502 = vmatprep.subr.mxu1 %v3200_v0  ;;  %v1173_v2 = vld [vmem:[#allocation6 + $0x178] sm:$0xff]  ;;  %v1172_v4 = vld [vmem:[#allocation6 + $0x170] sm:$0xff]  ;;  %v1139_v5 = vld [vmem:[#allocation6 + $0x68] sm:$0xff]  ;;  %s4252_s30 = scalar_lea.vmem [#allocation8], %s2615_s24  ;;  %s2814_s4 = sshll.u32 %s3186_s15, 12 }
  0x43   : > { %1278 = vmatpush1.msra.mxu0 %v1141_v1  ;;  %1503 = vmatpush1.msra.mxu1 %v1173_v2  ;;  %v1171_v6 = vld [vmem:[#allocation6 + $0x168] sm:$0xff]  ;;  %v1138_v7 = vld [vmem:[#allocation6 + $0x60] sm:$0xff]  ;;  %v1137_v9 = vld [vmem:[#allocation6 + $0x58] sm:$0xff]  ;;  %s2484_s26 = sshll.u32 %s4252_s30, 4  ;;  %s4333_s6 = scalar_lea.hbm %s4390_s3, %s2814_s4  ;;  %s4335_s26 = int_to_ptr.vmem [resolvable:$true] %s2484_s26 }
  0x44   : > { %1279 = vmatprep.subr.mxu0 %v3200_v0  ;;  %1504 = vmatprep.subr.mxu1 %v3200_v0  ;;  %v1170_v8 = vld [vmem:[#allocation6 + $0x160] sm:$0xff]  ;;  %v1169_v10 = vld [vmem:[#allocation6 + $0x158] sm:$0xff]  ;;  %v1136_v11 = vld [vmem:[#allocation6 + $0x50] sm:$0xff]  ;;  %s2467_s15 = scalar_lea.sflag [#allocation5], %s3339_s10  ;;  %s3110_s9 = scalar_lea.vmem %s4335_s26, 4096 }
  0x45   : > { %1280 = vmatpush1.msra.mxu0 %v1140_v3  ;;  %1505 = vmatpush1.msra.mxu1 %v1172_v4  ;;  %v1168_v12 = vld [vmem:[#allocation6 + $0x150] sm:$0xff]  ;;  %v1135_v13 = vld [vmem:[#allocation6 + $0x48] sm:$0xff]  ;;  %v1134_v15 = vld [vmem:[#allocation6 + $0x40] sm:$0xff]  ;;  %p3111_p1 = scmp.ne.s32.totalorder %s4335_s26, %s3110_s9  ;;  %s3201_s7 = smov [#allocation8]  }
  0x46   : > { %1281 = vmatprep.subr.mxu0 %v3200_v0  ;;  %1506 = vmatprep.subr.mxu1 %v3200_v0  ;;  %v1167_v14 = vld [vmem:[#allocation6 + $0x148] sm:$0xff]  ;;  %v1166_v16 = vld [vmem:[#allocation6 + $0x140] sm:$0xff]  ;;  %v1133_v17 = vld [vmem:[#allocation6 + $0x38] sm:$0xff]  ;;  %s3114_s11 = sshll.u32 %s3201_s7, 4  ;;  %s3115_s11 = int_to_ptr.vmem [resolvable:$false] %s3114_s11 }
  0x47   : > { %1282 = vmatpush1.msra.mxu0 %v1139_v5  ;;  %1507 = vmatpush1.msra.mxu1 %v1171_v6  ;;  %v1165_v18 = vld [vmem:[#allocation6 + $0x138] sm:$0xff]  ;;  %v1132_v19 = vld [vmem:[#allocation6 + $0x30] sm:$0xff]  ;;  %v1131_v21 = vld [vmem:[#allocation6 + $0x28] sm:$0xff]  ;;  %p3112_p8 = pnand %p3111_p1, %p3310_p13  ;;  %s3116_s25 = scalar_lea.vmem %s3115_s11, 8192 }
  0x48   : > { %1283 = vmatprep.subr.mxu0 %v3200_v0  ;;  %1508 = vmatprep.subr.mxu1 %v3200_v0  ;;  %v1164_v20 = vld [vmem:[#allocation6 + $0x130] sm:$0xff]  ;;  %v1163_v22 = vld [vmem:[#allocation6 + $0x128] sm:$0xff]  ;;  %v1130_v23 = vld [vmem:[#allocation6 + $0x20] sm:$0xff]  ;;  %p3117_p2 = scmp.lt.s32.totalorder %s4335_s26, %s3115_s11  ;;  %p3118_p5 = scmp.lt.s32.totalorder %s3116_s25, %s3110_s9 }
  0x49   : > { %1284 = vmatpush1.msra.mxu0 %v1138_v7  ;;  %1509 = vmatpush1.msra.mxu1 %v1170_v8  ;;  %v1162_v24 = vld [vmem:[#allocation6 + $0x120] sm:$0xff]  ;;  %v1129_v25 = vld [vmem:[#allocation6 + $0x18] sm:$0xff]  ;;  %v1128_v27 = vld [vmem:[#allocation6 + $0x10] sm:$0xff]  ;;  %p3113_p11 = pneg %p3112_p8 }
  0x4a   : > { %1285 = vmatprep.subr.mxu0 %v3200_v0  ;;  %1510 = vmatprep.subr.mxu1 %v3200_v0  ;;  %v1161_v26 = vld [vmem:[#allocation6 + $0x118] sm:$0xff]  ;;  %v1160_v28 = vld [vmem:[#allocation6 + $0x110] sm:$0xff]  ;;  %v1127_v29 = vld [vmem:[#allocation6 + $0x8] sm:$0xff]  ;;  %p3119_p7 = por %p3118_p5, %p3117_p2 }
  0x4b   : > { %1286 = vmatpush1.msra.mxu0 %v1137_v9  ;;  %1511 = vmatpush1.msra.mxu1 %v1169_v10  ;;  %v1159_v30 = vld [vmem:[#allocation6 + $0x108] sm:$0xff]  ;;  %v1126_v31 = vld [vmem:[#allocation6] sm:$0xff]  ;;  %v1157_v33 = vld [vmem:[#allocation6 + $0xf8] sm:$0xff] }
  0x4c   : > { %1287 = vmatprep.subr.mxu0 %v3200_v0  ;;  %1512 = vmatprep.subr.mxu1 %v3200_v0  ;;  %v1158_v32 = vld [vmem:[#allocation6 + $0x100] sm:$0xff]  ;;  %v1189_v34 = vld [vmem:[#allocation6 + $0x1f8] sm:$0xff]  ;;  %v1156_v35 = vld [vmem:[#allocation6 + $0xf0] sm:$0xff]  ;;  %p3120_p4 = pnand %p3119_p7, %p3113_p11 }
  0x4d   : > { %1288 = vmatpush1.msra.mxu0 %v1136_v11  ;;  %1513 = vmatpush1.msra.mxu1 %v1168_v12  ;;  %v1188_v36 = vld [vmem:[#allocation6 + $0x1f0] sm:$0xff]  ;;  %v1155_v37 = vld [vmem:[#allocation6 + $0xe8] sm:$0xff]  ;;  %v1154_v39 = vld [vmem:[#allocation6 + $0xe0] sm:$0xff] }
  0x4e   : > { %1289 = vmatprep.subr.mxu0 %v3200_v0  ;;  %1514 = vmatprep.subr.mxu1 %v3200_v0  ;;  %v1187_v38 = vld [vmem:[#allocation6 + $0x1e8] sm:$0xff]  ;;  %v1186_v40 = vld [vmem:[#allocation6 + $0x1e0] sm:$0xff]  ;;  %v1153_v41 = vld [vmem:[#allocation6 + $0xd8] sm:$0xff] }
  0x4f   : > { %1290 = vmatpush1.msra.mxu0 %v1135_v13  ;;  %1515 = vmatpush1.msra.mxu1 %v1167_v14  ;;  %v1185_v42 = vld [vmem:[#allocation6 + $0x1d8] sm:$0xff]  ;;  %v1152_v43 = vld [vmem:[#allocation6 + $0xd0] sm:$0xff]  ;;  %v1151_v45 = vld [vmem:[#allocation6 + $0xc8] sm:$0xff] }
  0x50   : > { %1291 = vmatprep.subr.mxu0 %v3200_v0  ;;  %1516 = vmatprep.subr.mxu1 %v3200_v0  ;;  %v1184_v44 = vld [vmem:[#allocation6 + $0x1d0] sm:$0xff]  ;;  %v1183_v46 = vld [vmem:[#allocation6 + $0x1c8] sm:$0xff]  ;;  %v1150_v47 = vld [vmem:[#allocation6 + $0xc0] sm:$0xff] }
  0x51   : > { %1292 = vmatpush1.msra.mxu0 %v1134_v15  ;;  %1517 = vmatpush1.msra.mxu1 %v1166_v16  ;;  %v1182_v48 = vld [vmem:[#allocation6 + $0x1c0] sm:$0xff]  ;;  %v1149_v49 = vld [vmem:[#allocation6 + $0xb8] sm:$0xff]  ;;  %v1148_v51 = vld [vmem:[#allocation6 + $0xb0] sm:$0xff] }
  0x52   : > { %1293 = vmatprep.subr.mxu0 %v3200_v0  ;;  %1518 = vmatprep.subr.mxu1 %v3200_v0  ;;  %v1181_v50 = vld [vmem:[#allocation6 + $0x1b8] sm:$0xff]  ;;  %v1180_v52 = vld [vmem:[#allocation6 + $0x1b0] sm:$0xff]  ;;  %v1147_v53 = vld [vmem:[#allocation6 + $0xa8] sm:$0xff] }
  0x53   : > { %1294 = vmatpush1.msra.mxu0 %v1133_v17  ;;  %1519 = vmatpush1.msra.mxu1 %v1165_v18  ;;  %v1179_v54 = vld [vmem:[#allocation6 + $0x1a8] sm:$0xff]  ;;  %v1146_v55 = vld [vmem:[#allocation6 + $0xa0] sm:$0xff]  ;;  %v1145_v57 = vld [vmem:[#allocation6 + $0x98] sm:$0xff] }
  0x54   : > { %1295 = vmatprep.subr.mxu0 %v3200_v0  ;;  %1520 = vmatprep.subr.mxu1 %v3200_v0  ;;  %v1178_v56 = vld [vmem:[#allocation6 + $0x1a0] sm:$0xff]  ;;  %v1177_v58 = vld [vmem:[#allocation6 + $0x198] sm:$0xff]  ;;  %v1144_v59 = vld [vmem:[#allocation6 + $0x90] sm:$0xff] }
  0x55   : > { %1296 = vmatpush1.msra.mxu0 %v1132_v19  ;;  %1521 = vmatpush1.msra.mxu1 %v1164_v20  ;;  %v1176_v60 = vld [vmem:[#allocation6 + $0x190] sm:$0xff]  ;;  %v1143_v61 = vld [vmem:[#allocation6 + $0x88] sm:$0xff]  ;;  %v1142_v63 = vld [vmem:[#allocation6 + $0x80] sm:$0xff] }
  0x56   : > { %1297 = vmatprep.subr.mxu0 %v3200_v0  ;;  %1522 = vmatprep.subr.mxu1 %v3200_v0  ;;  %v1175_v62 = vld [vmem:[#allocation6 + $0x188] sm:$0xff]  ;;  %v1174_v2 = vld [vmem:[#allocation6 + $0x180] sm:$0xff]  ;;  %v1205_v6 = vld [vmem:[#allocation6 + $0x278] sm:$0xff] }
  0x57   : > { %1298 = vmatpush1.msra.mxu0 %v1131_v21  ;;  %1523 = vmatpush1.msra.mxu1 %v1163_v22  ;;  %v320_v1 = vld [vmem:[%s3343_s21 + $0x1] sm:$0xff]  ;;  %v2616_v3 = vld [vmem:[%s3343_s21 + $0x18] sm:$0xff]  ;;  %v321_v8 = vld [vmem:[%s3343_s21 + $0x9] sm:$0xff] }
  0x58   : > { %1299 = vmatprep.subr.mxu0 %v3200_v0  ;;  %1524 = vmatprep.subr.mxu1 %v3200_v0  ;;  %v256_v4 = vld [vmem:[%s3343_s21] sm:$0xff]  ;;  %v1237_v7 = vld [vmem:[#allocation6 + $0x378] sm:$0xff]  ;;  %v3431_v15 = vld [vmem:[%s3343_s21 + $0x30] sm:$0xff] }
  0x59   : > { %1300 = vmatpush1.msra.mxu0 %v1130_v23  ;;  %1525 = vmatpush1.msra.mxu1 %v1162_v24  ;;  %v384_v5 = vld [vmem:[%s3343_s21 + $0x2] sm:$0xff]  ;;  %v385_v11 = vld [vmem:[%s3343_s21 + $0xa] sm:$0xff]  ;;  %v3428_v14 = vld [vmem:[%s3343_s21 + $0x19] sm:$0xff] }
  0x5a   : > { %1301 = vmatprep.subr.mxu0 %v3200_v0  ;;  %1526 = vmatprep.subr.mxu1 %v3200_v0  ;;  %v2617_v9 = vld [vmem:[%s3343_s21 + $0x20] sm:$0xff]  ;;  %v257_v10 = vld [vmem:[%s3343_s21 + $0x8] sm:$0xff]  ;;  %v3445_v20 = vld [vmem:[%s3343_s21 + $0x38] sm:$0xff] }
  0x5b   : > { %1302 = vmatpush1.msra.mxu0 %v1129_v25  ;;  %1527 = vmatpush1.msra.mxu1 %v1161_v26  ;;  %v1204_v12 = vld [vmem:[#allocation6 + $0x270] sm:$0xff]  ;;  %v1203_v17 = vld [vmem:[#allocation6 + $0x268] sm:$0xff]  ;;  %v1202_v22 = vld [vmem:[#allocation6 + $0x260] sm:$0xff] }
  0x5c   : > { %1303 = vmatprep.subr.mxu0 %v3200_v0  ;;  %1528 = vmatprep.subr.mxu1 %v3200_v0  ;;  %v1236_v13 = vld [vmem:[#allocation6 + $0x370] sm:$0xff]  ;;  %v1235_v18 = vld [vmem:[#allocation6 + $0x368] sm:$0xff]  ;;  %v1234_v23 = vld [vmem:[#allocation6 + $0x360] sm:$0xff] }
  0x5d   : > { %1304 = vmatpush1.msra.mxu0 %v1128_v27  ;;  %1529 = vmatpush1.msra.mxu1 %v1160_v28  ;;  %v3436_v16 = vld [vmem:[%s3343_s21 + $0x1a] sm:$0xff]  ;;  %v3450_v21 = vld [vmem:[%s3343_s21 + $0x22] sm:$0xff]  ;;  %v3456_v24 = vld [vmem:[%s3343_s21 + $0x31] sm:$0xff] }
  0x5e   : > { %1305 = vmatprep.subr.mxu0 %v3200_v0  ;;  %1530 = vmatprep.subr.mxu1 %v3200_v0  ;;  %v3442_v19 = vld [vmem:[%s3343_s21 + $0x21] sm:$0xff]  ;;  %v3464_v26 = vld [vmem:[%s3343_s21 + $0x32] sm:$0xff] }
  0x5f   : > { %1306 = vmatpush1.msra.mxu0 %v1127_v29  ;;  %1531 = vmatpush1.msra.mxu1 %v1159_v30  ;;  %v3459_v25 = vld [vmem:[%s3343_s21 + $0x48] sm:$0xff]  ;;  %v3471_v29 = vld [vmem:[%s3343_s21 + $0x39] sm:$0xff]  ;;  %v3474_v30 = vld [vmem:[%s3343_s21 + $0x50] sm:$0xff] }
  0x60   : > { %1307 = vmatprep.subr.mxu0 %v3200_v0  ;;  %1532 = vmatprep.subr.mxu1 %v3200_v0  ;;  %v1201_v27 = vld [vmem:[#allocation6 + $0x258] sm:$0xff] }
  0x61   : > { %1308 = vmatpush1.msra.mxu0 %v1126_v31  ;;  %1533 = vmatpush1.msra.mxu1 %v1158_v32  ;;  %v1233_v28 = vld [vmem:[#allocation6 + $0x358] sm:$0xff]  ;;  %v1200_v32 = vld [vmem:[#allocation6 + $0x250] sm:$0xff] }
  0x62   : > { %1309 = vmatprep.subr.mxu0 %v3200_v0  ;;  %1534 = vmatprep.subr.mxu1 %v3200_v0  ;;  %v3479_v31 = vld [vmem:[%s3343_s21 + $0x3a] sm:$0xff] }
  0x63   : > { %1310 = vmatpush2.msra.mxu0 %v1157_v33  ;;  %1535 = vmatpush2.msra.mxu1 %v1189_v34  ;;  %v1232_v33 = vld [vmem:[#allocation6 + $0x350] sm:$0xff] }
  0x64   : > { %1311 = vmatprep.subr.mxu0 %v3200_v0  ;;  %1536 = vmatprep.subr.mxu1 %v3200_v0  ;;  %v3486_v34 = vld [vmem:[%s3343_s21 + $0x49] sm:$0xff] }
  0x65   : > { %1312 = vmatpush2.msra.mxu0 %v1156_v35  ;;  %1537 = vmatpush2.msra.mxu1 %v1188_v36  ;;  %v3489_v35 = vld [vmem:[%s3343_s21 + $0x60] sm:$0xff]  ;;  %v3494_v36 = vld [vmem:[%s3343_s21 + $0x4a] sm:$0xff] }
  0x66   : > { %1313 = vmatprep.subr.mxu0 %v3200_v0  ;;  %1538 = vmatprep.subr.mxu1 %v3200_v0 }
  0x67   : > { %1314 = vmatpush2.msra.mxu0 %v1155_v37  ;;  %1539 = vmatpush2.msra.mxu1 %v1187_v38  ;;  %v1199_v37 = vld [vmem:[#allocation6 + $0x248] sm:$0xff] }
  0x68   : > { %1315 = vmatprep.subr.mxu0 %v3200_v0  ;;  %1540 = vmatprep.subr.mxu1 %v3200_v0  ;;  %v1231_v38 = vld [vmem:[#allocation6 + $0x348] sm:$0xff] }
  0x69   : > { %1316 = vmatpush2.msra.mxu0 %v1154_v39  ;;  %1541 = vmatpush2.msra.mxu1 %v1186_v40  ;;  %v3501_v39 = vld [vmem:[%s3343_s21 + $0x51] sm:$0xff]  ;;  %v3504_v40 = vld [vmem:[%s3343_s21 + $0x68] sm:$0xff] }
  0x6a   : > { %1317 = vmatprep.subr.mxu0 %v3200_v0  ;;  %1542 = vmatprep.subr.mxu1 %v3200_v0 }
  0x6b   : > { %1318 = vmatpush2.msra.mxu0 %v1153_v41  ;;  %1543 = vmatpush2.msra.mxu1 %v1185_v42  ;;  %v3509_v41 = vld [vmem:[%s3343_s21 + $0x52] sm:$0xff] }
  0x6c   : > { %1319 = vmatprep.subr.mxu0 %v3200_v0  ;;  %1544 = vmatprep.subr.mxu1 %v3200_v0  ;;  %v1198_v42 = vld [vmem:[#allocation6 + $0x240] sm:$0xff] }
  0x6d   : > { %1320 = vmatpush2.msra.mxu0 %v1152_v43  ;;  %1545 = vmatpush2.msra.mxu1 %v1184_v44  ;;  %v1230_v43 = vld [vmem:[#allocation6 + $0x340] sm:$0xff] }
  0x6e   : > { %1321 = vmatprep.subr.mxu0 %v3200_v0  ;;  %1546 = vmatprep.subr.mxu1 %v3200_v0  ;;  %v3516_v44 = vld [vmem:[%s3343_s21 + $0x61] sm:$0xff] }
  0x6f   : > { %1322 = vmatpush2.msra.mxu0 %v1151_v45  ;;  %1547 = vmatpush2.msra.mxu1 %v1183_v46  ;;  %v3519_v45 = vld [vmem:[%s3343_s21 + $0x78] sm:$0xff]  ;;  %v3524_v46 = vld [vmem:[%s3343_s21 + $0x62] sm:$0xff] }
  0x70   : > { %1323 = vmatprep.subr.mxu0 %v3200_v0  ;;  %1548 = vmatprep.subr.mxu1 %v3200_v0 }
  0x71   : > { %1324 = vmatpush2.msra.mxu0 %v1150_v47  ;;  %1549 = vmatpush2.msra.mxu1 %v1182_v48  ;;  %v1197_v47 = vld [vmem:[#allocation6 + $0x238] sm:$0xff] }
  0x72   : > { %1325 = vmatprep.subr.mxu0 %v3200_v0  ;;  %1550 = vmatprep.subr.mxu1 %v3200_v0  ;;  %v1229_v48 = vld [vmem:[#allocation6 + $0x338] sm:$0xff] }
  0x73   : > { %1326 = vmatpush2.msra.mxu0 %v1149_v49  ;;  %1551 = vmatpush2.msra.mxu1 %v1181_v50  ;;  %v3531_v49 = vld [vmem:[%s3343_s21 + $0x69] sm:$0xff]  ;;  %v3534_v50 = vld [vmem:[%s3343_s21 + $0x80] sm:$0xff] }
  0x74   : > { %1327 = vmatprep.subr.mxu0 %v3200_v0  ;;  %1552 = vmatprep.subr.mxu1 %v3200_v0 }
  0x75   : > { %1328 = vmatpush2.msra.mxu0 %v1148_v51  ;;  %1553 = vmatpush2.msra.mxu1 %v1180_v52  ;;  %v3539_v51 = vld [vmem:[%s3343_s21 + $0x6a] sm:$0xff] }
  0x76   : > { %1329 = vmatprep.subr.mxu0 %v3200_v0  ;;  %1554 = vmatprep.subr.mxu1 %v3200_v0  ;;  %v1196_v52 = vld [vmem:[#allocation6 + $0x230] sm:$0xff] }
  0x77   : > { %1330 = vmatpush2.msra.mxu0 %v1147_v53  ;;  %1555 = vmatpush2.msra.mxu1 %v1179_v54  ;;  %v1228_v53 = vld [vmem:[#allocation6 + $0x330] sm:$0xff] }
  0x78   : > { %1331 = vmatprep.subr.mxu0 %v3200_v0  ;;  %1556 = vmatprep.subr.mxu1 %v3200_v0  ;;  %v3546_v54 = vld [vmem:[%s3343_s21 + $0x79] sm:$0xff] }
  0x79   : > { %1332 = vmatpush2.msra.mxu0 %v1146_v55  ;;  %1557 = vmatpush2.msra.mxu1 %v1178_v56  ;;  %v3549_v55 = vld [vmem:[%s3343_s21 + $0x90] sm:$0xff]  ;;  %v3554_v56 = vld [vmem:[%s3343_s21 + $0x7a] sm:$0xff] }
  0x7a   : > { %1333 = vmatprep.subr.mxu0 %v3200_v0  ;;  %1558 = vmatprep.subr.mxu1 %v3200_v0 }
  0x7b   : > { %1334 = vmatpush2.msra.mxu0 %v1145_v57  ;;  %1559 = vmatpush2.msra.mxu1 %v1177_v58  ;;  %v1195_v57 = vld [vmem:[#allocation6 + $0x228] sm:$0xff] }
  0x7c   : > { %1335 = vmatprep.subr.mxu0 %v3200_v0  ;;  %1560 = vmatprep.subr.mxu1 %v3200_v0  ;;  %v1227_v58 = vld [vmem:[#allocation6 + $0x328] sm:$0xff] }
  0x7d   : > { %1336 = vmatpush2.msra.mxu0 %v1144_v59  ;;  %1561 = vmatpush2.msra.mxu1 %v1176_v60  ;;  %v3561_v59 = vld [vmem:[%s3343_s21 + $0x81] sm:$0xff]  ;;  %v3564_v60 = vld [vmem:[%s3343_s21 + $0x98] sm:$0xff] }
  0x7e   : > { %1337 = vmatprep.subr.mxu0 %v3200_v0  ;;  %1562 = vmatprep.subr.mxu1 %v3200_v0 }
  0x7f   : > { %1338 = vmatpush2.msra.mxu0 %v1143_v61  ;;  %1563 = vmatpush2.msra.mxu1 %v1175_v62  ;;  %v3569_v61 = vld [vmem:[%s3343_s21 + $0x82] sm:$0xff] }
  0x80   : > { %1339 = vmatprep.subr.mxu0 %v3200_v0  ;;  %1564 = vmatprep.subr.mxu1 %v3200_v0  ;;  %v1194_v62 = vld [vmem:[#allocation6 + $0x220] sm:$0xff] }
  0x81   : > { %1340 = vmatpush2.msra.mxu0 %v1142_v63  ;;  %1341 = vmatprep.mubr.f32.mxu0 %v320_v1  ;;  %v1226_v63 = vld [vmem:[#allocation6 + $0x320] sm:$0xff] }
  0x82   : > { %1565 = vmatpush2.msra.mxu1 %v1174_v2  ;;  %1566 = vmatprep.mubr.f32.mxu1 %v2616_v3  ;;  %v3576_v1 = vld [vmem:[%s3343_s21 + $0x91] sm:$0xff]  ;;  %v3579_v2 = vld [vmem:[%s3343_s21 + $0xa8] sm:$0xff] }
  0x83   : > { %1342 = vmatmul.mubr.f32.vlgmr.msra.gmra.mxu0 %v256_v4  ;;  %1567 = vmatmul.mubr.f32.vlgmr.msra.gmra.mxu1 %v384_v5  ;;  %v1193_v4 = vld [vmem:[#allocation6 + $0x218] sm:$0xff] }
  0x84   : > { %1727 = vmatprep.subr.mxu0 %v3200_v0  ;;  %1952 = vmatprep.subr.mxu1 %v3200_v0  ;;  %v1225_v5 = vld [vmem:[#allocation6 + $0x318] sm:$0xff] }
  0x85   : > { %1728 = vmatpush1.msra.mxu0 %v1205_v6  ;;  %1953 = vmatpush1.msra.mxu1 %v1237_v7  ;;  %v3591_v6 = vld [vmem:[%s3343_s21 + $0x99] sm:$0xff]  ;;  %v3594_v7 = vld [vmem:[%s3343_s21 + $0xb0] sm:$0xff] }
  0x86   : > { %1346 = vmatprep.mubr.f32.mxu0 %v321_v8  ;;  %1571 = vmatprep.mubr.f32.mxu1 %v2617_v9  ;;  %v3599_v8 = vld [vmem:[%s3343_s21 + $0x9a] sm:$0xff] }
  0x87   : > { %1347 = vmatmul.mubr.f32.gmra.mxu0 %v257_v10  ;;  %1572 = vmatmul.mubr.f32.gmra.mxu1 %v385_v11  ;;  %v1224_v10 = vld [vmem:[#allocation6 + $0x310] sm:$0xff] }
  0x88   : > { %1729 = vmatprep.subr.mxu0 %v3200_v0  ;;  %1954 = vmatprep.subr.mxu1 %v3200_v0  ;;  %v3606_v11 = vld [vmem:[%s3343_s21 + $0xa9] sm:$0xff] }
  0x89   : > { %1730 = vmatpush1.msra.mxu0 %v1204_v12  ;;  %1955 = vmatpush1.msra.mxu1 %v1236_v13  ;;  %v3609_v12 = vld [vmem:[%s3343_s21 + $0xc0] sm:$0xff]  ;;  %v3614_v13 = vld [vmem:[%s3343_s21 + $0xaa] sm:$0xff] }
  0x8a   : > { %1351 = vmatprep.mubr.f32.mxu0 %v3428_v14  ;;  %1576 = vmatprep.mubr.f32.mxu1 %v3431_v15 }
  0x8b   : > { %1352 = vmatmul.mubr.f32.gmra.mxu0 %v2616_v3  ;;  %1577 = vmatmul.mubr.f32.gmra.mxu1 %v3436_v16  ;;  %v3584_v3 = vld [vmem:[%s3343_s21 + $0x92] sm:$0xff] }
  0x8c   : > { %1731 = vmatprep.subr.mxu0 %v3200_v0  ;;  %1956 = vmatprep.subr.mxu1 %v3200_v0 }
  0x8d   : > { %1732 = vmatpush1.msra.mxu0 %v1203_v17  ;;  %1957 = vmatpush1.msra.mxu1 %v1235_v18  ;;  %v1191_v17 = vld [vmem:[#allocation6 + $0x208] sm:$0xff] }
  0x8e   : > { %1356 = vmatprep.mubr.f32.mxu0 %v3442_v19  ;;  %1581 = vmatprep.mubr.f32.mxu1 %v3445_v20  ;;  %v1223_v18 = vld [vmem:[#allocation6 + $0x308] sm:$0xff] }
  0x8f   : > { %1357 = vmatmul.mubr.f32.gmra.mxu0 %v2617_v9  ;;  %1582 = vmatmul.mubr.f32.gmra.mxu1 %v3450_v21  ;;  %v1192_v9 = vld [vmem:[#allocation6 + $0x210] sm:$0xff] }
  0x90   : > { %1733 = vmatprep.subr.mxu0 %v3200_v0  ;;  %1958 = vmatprep.subr.mxu1 %v3200_v0 }
  0x91   : > { %1734 = vmatpush1.msra.mxu0 %v1202_v22  ;;  %1959 = vmatpush1.msra.mxu1 %v1234_v23  ;;  %v3621_v22 = vld [vmem:[%s3343_s21 + $0xb1] sm:$0xff]  ;;  %v3624_v23 = vld [vmem:[%s3343_s21 + $0xc8] sm:$0xff] }
  0x92   : > { %1361 = vmatprep.mubr.f32.mxu0 %v3456_v24  ;;  %1586 = vmatprep.mubr.f32.mxu1 %v3459_v25 }
  0x93   : > { %1362 = vmatmul.mubr.f32.gmra.mxu0 %v3431_v15  ;;  %1587 = vmatmul.mubr.f32.gmra.mxu1 %v3464_v26 }
  0x94   : > { %1735 = vmatprep.subr.mxu0 %v3200_v0  ;;  %1960 = vmatprep.subr.mxu1 %v3200_v0 }
  0x95   : > { %1736 = vmatpush1.msra.mxu0 %v1201_v27  ;;  %1961 = vmatpush1.msra.mxu1 %v1233_v28  ;;  %v3629_v27 = vld [vmem:[%s3343_s21 + $0xb2] sm:$0xff] }
  0x96   : > { %1366 = vmatprep.mubr.f32.mxu0 %v3471_v29  ;;  %1591 = vmatprep.mubr.f32.mxu1 %v3474_v30  ;;  %v1190_v28 = vld [vmem:[#allocation6 + $0x200] sm:$0xff] }
  0x97   : > { %1367 = vmatmul.mubr.f32.gmra.mxu0 %v3445_v20  ;;  %1592 = vmatmul.mubr.f32.gmra.mxu1 %v3479_v31 }
  0x98   : > { %1737 = vmatprep.subr.mxu0 %v3200_v0  ;;  %1962 = vmatprep.subr.mxu1 %v3200_v0 }
  0x99   : > { %1738 = vmatpush1.msra.mxu0 %v1200_v32  ;;  %1963 = vmatpush1.msra.mxu1 %v1232_v33  ;;  %v1222_v32 = vld [vmem:[#allocation6 + $0x300] sm:$0xff] }
  0x9a   : > { %1371 = vmatprep.mubr.f32.mxu0 %v3486_v34  ;;  %1596 = vmatprep.mubr.f32.mxu1 %v3489_v35  ;;  %v3636_v33 = vld [vmem:[%s3343_s21 + $0xc1] sm:$0xff] }
  0x9b   : > { %1372 = vmatmul.mubr.f32.gmra.mxu0 %v3459_v25  ;;  %1597 = vmatmul.mubr.f32.gmra.mxu1 %v3494_v36 }
  0x9c   : > { %1739 = vmatprep.subr.mxu0 %v3200_v0  ;;  %1964 = vmatprep.subr.mxu1 %v3200_v0 }
  0x9d   : > { %1740 = vmatpush1.msra.mxu0 %v1199_v37  ;;  %1965 = vmatpush1.msra.mxu1 %v1231_v38  ;;  %v3639_v37 = vld [vmem:[%s3343_s21 + $0xd8] sm:$0xff]  ;;  %v3644_v38 = vld [vmem:[%s3343_s21 + $0xc2] sm:$0xff] }
  0x9e   : > { %1376 = vmatprep.mubr.f32.mxu0 %v3501_v39  ;;  %1601 = vmatprep.mubr.f32.mxu1 %v3504_v40 }
  0x9f   : > { %1377 = vmatmul.mubr.f32.gmra.mxu0 %v3474_v30  ;;  %1602 = vmatmul.mubr.f32.gmra.mxu1 %v3509_v41 }
  0xa0   : > { %1741 = vmatprep.subr.mxu0 %v3200_v0  ;;  %1966 = vmatprep.subr.mxu1 %v3200_v0 }
  0xa1   : > { %1742 = vmatpush1.msra.mxu0 %v1198_v42  ;;  %1967 = vmatpush1.msra.mxu1 %v1230_v43  ;;  %v1221_v42 = vld [vmem:[#allocation6 + $0x2f8] sm:$0xff] }
  0xa2   : > { %1381 = vmatprep.mubr.f32.mxu0 %v3516_v44  ;;  %1606 = vmatprep.mubr.f32.mxu1 %v3519_v45  ;;  %v1253_v43 = vld [vmem:[#allocation6 + $0x3f8] sm:$0xff] }
  0xa3   : > { %1382 = vmatmul.mubr.f32.gmra.mxu0 %v3489_v35  ;;  %1607 = vmatmul.mubr.f32.gmra.mxu1 %v3524_v46 }
  0xa4   : > { %1743 = vmatprep.subr.mxu0 %v3200_v0  ;;  %1968 = vmatprep.subr.mxu1 %v3200_v0 }
  0xa5   : > { %1744 = vmatpush1.msra.mxu0 %v1197_v47  ;;  %1969 = vmatpush1.msra.mxu1 %v1229_v48  ;;  %v3651_v47 = vld [vmem:[%s3343_s21 + $0xc9] sm:$0xff]  ;;  %v3654_v48 = vld [vmem:[%s3343_s21 + $0xe0] sm:$0xff] }
  0xa6   : > { %1386 = vmatprep.mubr.f32.mxu0 %v3531_v49  ;;  %1611 = vmatprep.mubr.f32.mxu1 %v3534_v50 }
  0xa7   : > { %1387 = vmatmul.mubr.f32.gmra.mxu0 %v3504_v40  ;;  %1612 = vmatmul.mubr.f32.gmra.mxu1 %v3539_v51 }
  0xa8   : > { %1745 = vmatprep.subr.mxu0 %v3200_v0  ;;  %1970 = vmatprep.subr.mxu1 %v3200_v0 }
  0xa9   : > { %1746 = vmatpush1.msra.mxu0 %v1196_v52  ;;  %1971 = vmatpush1.msra.mxu1 %v1228_v53  ;;  %v3659_v52 = vld [vmem:[%s3343_s21 + $0xca] sm:$0xff] }
  0xaa   : > { %1391 = vmatprep.mubr.f32.mxu0 %v3546_v54  ;;  %1616 = vmatprep.mubr.f32.mxu1 %v3549_v55  ;;  %v1220_v53 = vld [vmem:[#allocation6 + $0x2f0] sm:$0xff] }
  0xab   : > { %1392 = vmatmul.mubr.f32.gmra.mxu0 %v3519_v45  ;;  %1617 = vmatmul.mubr.f32.gmra.mxu1 %v3554_v56 }
  0xac   : > { %1747 = vmatprep.subr.mxu0 %v3200_v0  ;;  %1972 = vmatprep.subr.mxu1 %v3200_v0 }
  0xad   : > { %1748 = vmatpush1.msra.mxu0 %v1195_v57  ;;  %1973 = vmatpush1.msra.mxu1 %v1227_v58  ;;  %v1252_v57 = vld [vmem:[#allocation6 + $0x3f0] sm:$0xff] }
  0xae   : > { %1396 = vmatprep.mubr.f32.mxu0 %v3561_v59  ;;  %1621 = vmatprep.mubr.f32.mxu1 %v3564_v60  ;;  %v3666_v58 = vld [vmem:[%s3343_s21 + $0xd9] sm:$0xff] }
  0xaf   : > { %1397 = vmatmul.mubr.f32.gmra.mxu0 %v3534_v50  ;;  %1622 = vmatmul.mubr.f32.gmra.mxu1 %v3569_v61 }
  0xb0   : > { %1749 = vmatprep.subr.mxu0 %v3200_v0  ;;  %1974 = vmatprep.subr.mxu1 %v3200_v0 }
  0xb1   : > { %1750 = vmatpush1.msra.mxu0 %v1194_v62  ;;  %1975 = vmatpush1.msra.mxu1 %v1226_v63  ;;  %v3669_v62 = vld [vmem:[%s3343_s21 + $0xf0] sm:$0xff]  ;;  %v3674_v63 = vld [vmem:[%s3343_s21 + $0xda] sm:$0xff] }
  0xb2   : > { %1401 = vmatprep.mubr.f32.mxu0 %v3576_v1  ;;  %1626 = vmatprep.mubr.f32.mxu1 %v3579_v2  ;;  %4442 = vst [vmem:[#allocation12_spill] sm:$0xff] %v3669_v62 }
  0xb3   : > { %1402 = vmatmul.mubr.f32.gmra.mxu0 %v3549_v55  ;;  %1627 = vmatmul.mubr.f32.gmra.mxu1 %v3584_v3 }
  0xb4   : > { %1751 = vmatprep.subr.mxu0 %v3200_v0  ;;  %1976 = vmatprep.subr.mxu1 %v3200_v0 }
  0xb5   : > { %1752 = vmatpush1.msra.mxu0 %v1193_v4  ;;  %1977 = vmatpush1.msra.mxu1 %v1225_v5  ;;  %v1219_v4 = vld [vmem:[#allocation6 + $0x2e8] sm:$0xff] }
  0xb6   : > { %1406 = vmatprep.mubr.f32.mxu0 %v3591_v6  ;;  %1631 = vmatprep.mubr.f32.mxu1 %v3594_v7  ;;  %v1251_v5 = vld [vmem:[#allocation6 + $0x3e8] sm:$0xff] }
  0xb7   : > { %1407 = vmatmul.mubr.f32.gmra.mxu0 %v3564_v60  ;;  %1632 = vmatmul.mubr.f32.gmra.mxu1 %v3599_v8 }
  0xb8   : > { %1753 = vmatprep.subr.mxu0 %v3200_v0  ;;  %1978 = vmatprep.subr.mxu1 %v3200_v0 }
  0xb9   : > { %1754 = vmatpush1.msra.mxu0 %v1192_v9  ;;  %1979 = vmatpush1.msra.mxu1 %v1224_v10  ;;  %v3681_v9 = vld [vmem:[%s3343_s21 + $0xe1] sm:$0xff]  ;;  %v3684_v10 = vld [vmem:[%s3343_s21 + $0xf8] sm:$0xff] }
  0xba   : > { %1411 = vmatprep.mubr.f32.mxu0 %v3606_v11  ;;  %1636 = vmatprep.mubr.f32.mxu1 %v3609_v12  ;;  %4443 = vst [vmem:[#allocation13_spill] sm:$0xff] %v3684_v10 }
  0xbb   : > { %1412 = vmatmul.mubr.f32.gmra.mxu0 %v3579_v2  ;;  %1637 = vmatmul.mubr.f32.gmra.mxu1 %v3614_v13 }
  0xbc   : > { %1755 = vmatprep.subr.mxu0 %v3200_v0  ;;  %1980 = vmatprep.subr.mxu1 %v3200_v0 }
  0xbd   : > { %1756 = vmatpush1.msra.mxu0 %v1191_v17  ;;  %1981 = vmatpush1.msra.mxu1 %v1223_v18  ;;  %v3689_v17 = vld [vmem:[%s3343_s21 + $0xe2] sm:$0xff] }
  0xbe   : > { %1416 = vmatprep.mubr.f32.mxu0 %v3621_v22  ;;  %1641 = vmatprep.mubr.f32.mxu1 %v3624_v23  ;;  %4444 = vst [vmem:[#allocation14_spill] sm:$0xff] %v3689_v17  ;;  %v1218_v18 = vld [vmem:[#allocation6 + $0x2e0] sm:$0xff] }
  0xbf   : > { %1417 = vmatmul.mubr.f32.gmra.mxu0 %v3594_v7  ;;  %1642 = vmatmul.mubr.f32.gmra.mxu1 %v3629_v27 }
  0xc0   : > { %1757 = vmatprep.subr.mxu0 %v3200_v0  ;;  %1982 = vmatprep.subr.mxu1 %v3200_v0 }
  0xc1   : > { %1758 = vmatpush1.msra.mxu0 %v1190_v28  ;;  %1983 = vmatpush1.msra.mxu1 %v1222_v32  ;;  %v1250_v28 = vld [vmem:[#allocation6 + $0x3e0] sm:$0xff] }
  0xc2   : > { %1421 = vmatprep.mubr.f32.mxu0 %v3636_v33  ;;  %1646 = vmatprep.mubr.f32.mxu1 %v3639_v37  ;;  %v3696_v32 = vld [vmem:[%s3343_s21 + $0xf1] sm:$0xff] }
  0xc3   : > { %1422 = vmatmul.mubr.f32.gmra.mxu0 %v3609_v12  ;;  %1647 = vmatmul.mubr.f32.gmra.mxu1 %v3644_v38 }
  0xc4   : > { %1759 = vmatprep.subr.mxu0 %v3200_v0  ;;  %1984 = vmatprep.subr.mxu1 %v3200_v0 }
  0xc5   : > { %1760 = vmatpush2.msra.mxu0 %v1221_v42  ;;  %1985 = vmatpush2.msra.mxu1 %v1253_v43  ;;  %v3699_v42 = vld [vmem:[%s3343_s21 + $0x108] sm:$0xff]  ;;  %v3704_v43 = vld [vmem:[%s3343_s21 + $0xf2] sm:$0xff] }
  0xc6   : > { %1426 = vmatprep.mubr.f32.mxu0 %v3651_v47  ;;  %1651 = vmatprep.mubr.f32.mxu1 %v3654_v48  ;;  %4445 = vst [vmem:[#allocation15_spill] sm:$0xff] %v3699_v42  ;;  %4446 = vst [vmem:[#allocation16_spill] sm:$0xff] %v3704_v43 }
  0xc7   : > { %1427 = vmatmul.mubr.f32.gmra.mxu0 %v3624_v23  ;;  %1652 = vmatmul.mubr.f32.gmra.mxu1 %v3659_v52 }
  0xc8   : > { %1761 = vmatprep.subr.mxu0 %v3200_v0  ;;  %1986 = vmatprep.subr.mxu1 %v3200_v0 }
  0xc9   : > { %1762 = vmatpush2.msra.mxu0 %v1220_v53  ;;  %1987 = vmatpush2.msra.mxu1 %v1252_v57  ;;  %v1217_v53 = vld [vmem:[#allocation6 + $0x2d8] sm:$0xff] }
  0xca   : > { %1431 = vmatprep.mubr.f32.mxu0 %v3666_v58  ;;  %1656 = vmatprep.mubr.f32.mxu1 %v3669_v62  ;;  %v1249_v57 = vld [vmem:[#allocation6 + $0x3d8] sm:$0xff] }
  0xcb   : > { %1432 = vmatmul.mubr.f32.gmra.mxu0 %v3639_v37  ;;  %1657 = vmatmul.mubr.f32.gmra.mxu1 %v3674_v63 }
  0xcc   : > { %1763 = vmatprep.subr.mxu0 %v3200_v0  ;;  %1988 = vmatprep.subr.mxu1 %v3200_v0 }
  0xcd   : > { %1764 = vmatpush2.msra.mxu0 %v1219_v4  ;;  %1989 = vmatpush2.msra.mxu1 %v1251_v5  ;;  %v3711_v4 = vld [vmem:[%s3343_s21 + $0xf9] sm:$0xff]  ;;  %v3714_v5 = vld [vmem:[%s3343_s21 + $0x110] sm:$0xff] }
  0xce   : > { %1436 = vmatprep.mubr.f32.mxu0 %v3681_v9  ;;  %1661 = vmatprep.mubr.f32.mxu1 %v3684_v10  ;;  %4447 = vst [vmem:[#allocation17_spill] sm:$0xff] %v3711_v4  ;;  %4448 = vst [vmem:[#allocation18_spill] sm:$0xff] %v3714_v5 }
  0xcf   : > { %1437 = vmatmul.mubr.f32.gmra.mxu0 %v3654_v48  ;;  %1662 = vmatmul.mubr.f32.gmra.mxu1 %v3689_v17  ;;  %v1248_v17 = vld [vmem:[#allocation6 + $0x3d0] sm:$0xff] }
  0xd0   : > { %1765 = vmatprep.subr.mxu0 %v3200_v0  ;;  %1990 = vmatprep.subr.mxu1 %v3200_v0 }
  0xd1   : > { %1766 = vmatpush2.msra.mxu0 %v1218_v18  ;;  %1991 = vmatpush2.msra.mxu1 %v1250_v28  ;;  %v3719_v18 = vld [vmem:[%s3343_s21 + $0xfa] sm:$0xff] }
  0xd2   : > { %1441 = vmatprep.mubr.f32.mxu0 %v3696_v32  ;;  %1666 = vmatprep.mubr.f32.mxu1 %v3699_v42  ;;  %4449 = vst [vmem:[#allocation19_spill] sm:$0xff] %v3719_v18  ;;  %v1216_v28 = vld [vmem:[#allocation6 + $0x2d0] sm:$0xff] }
  0xd3   : > { %1442 = vmatmul.mubr.f32.gmra.mxu0 %v3669_v62  ;;  %1667 = vmatmul.mubr.f32.gmra.mxu1 %v3704_v43  ;;  %v3726_v43 = vld [vmem:[%s3343_s21 + $0x109] sm:$0xff]  ;;  %v3729_v62 = vld [vmem:[%s3343_s21 + $0x120] sm:$0xff] }
  0xd4   : > { %1767 = vmatprep.subr.mxu0 %v3200_v0  ;;  %1992 = vmatprep.subr.mxu1 %v3200_v0  ;;  %4450 = vst [vmem:[#allocation20_spill] sm:$0xff] %v3726_v43  ;;  %4451 = vst [vmem:[#allocation21_spill] sm:$0xff] %v3729_v62 }
  0xd5   : > { %1768 = vmatpush2.msra.mxu0 %v1217_v53  ;;  %1993 = vmatpush2.msra.mxu1 %v1249_v57  ;;  %v3734_v53 = vld [vmem:[%s3343_s21 + $0x10a] sm:$0xff] }
  0xd6   : > { %1446 = vmatprep.mubr.f32.mxu0 %v3711_v4  ;;  %1671 = vmatprep.mubr.f32.mxu1 %v3714_v5  ;;  %4452 = vst [vmem:[#allocation22_spill] sm:$0xff] %v3734_v53  ;;  %v1215_v57 = vld [vmem:[#allocation6 + $0x2c8] sm:$0xff] }
  0xd7   : > { %1447 = vmatmul.mubr.f32.gmra.mxu0 %v3684_v10  ;;  %1672 = vmatmul.mubr.f32.gmra.mxu1 %v3719_v18  ;;  %v1247_v10 = vld [vmem:[#allocation6 + $0x3c8] sm:$0xff] }
  0xd8   : > { %1769 = vmatprep.subr.mxu0 %v3200_v0  ;;  %1994 = vmatprep.subr.mxu1 %v3200_v0  ;;  %v3741_v18 = vld [vmem:[%s3343_s21 + $0x111] sm:$0xff]  ;;  %v3744_v4 = vld [vmem:[%s3343_s21 + $0x128] sm:$0xff] }
  0xd9   : > { %1770 = vmatpush2.msra.mxu0 %v1216_v28  ;;  %1995 = vmatpush2.msra.mxu1 %v1248_v17  ;;  %4453 = vst [vmem:[#allocation23_spill] sm:$0xff] %v3741_v18  ;;  %4454 = vst [vmem:[#allocation24_spill] sm:$0xff] %v3744_v4  ;;  %v3749_v17 = vld [vmem:[%s3343_s21 + $0x112] sm:$0xff] }
  0xda   : > { %1451 = vmatprep.mubr.f32.mxu0 %v3726_v43  ;;  %1676 = vmatprep.mubr.f32.mxu1 %v3729_v62  ;;  %4455 = vst [vmem:[#allocation25_spill] sm:$0xff] %v3749_v17  ;;  %v1214_v28 = vld [vmem:[#allocation6 + $0x2c0] sm:$0xff]  ;;  %v3759_v43 = vld [vmem:[%s3343_s21 + $0x138] sm:$0xff] }
  0xdb   : > { %1452 = vmatmul.mubr.f32.gmra.mxu0 %v3699_v42  ;;  %1677 = vmatmul.mubr.f32.gmra.mxu1 %v3734_v53  ;;  %v1246_v42 = vld [vmem:[#allocation6 + $0x3c0] sm:$0xff]  ;;  %4457 = vst [vmem:[#allocation27_spill] sm:$0xff] %v3759_v43 }
  0xdc   : > { %1771 = vmatprep.subr.mxu0 %v3200_v0  ;;  %1996 = vmatprep.subr.mxu1 %v3200_v0  ;;  %v3756_v53 = vld [vmem:[%s3343_s21 + $0x121] sm:$0xff] }
  0xdd   : > { %1772 = vmatpush2.msra.mxu0 %v1215_v57  ;;  %1997 = vmatpush2.msra.mxu1 %v1247_v10  ;;  %4456 = vst [vmem:[#allocation26_spill] sm:$0xff] %v3756_v53  ;;  %v3764_v10 = vld [vmem:[%s3343_s21 + $0x122] sm:$0xff] }
  0xde   : > { %1456 = vmatprep.mubr.f32.mxu0 %v3741_v18  ;;  %1681 = vmatprep.mubr.f32.mxu1 %v3744_v4  ;;  %4458 = vst [vmem:[#allocation28_spill] sm:$0xff] %v3764_v10  ;;  %v1213_v57 = vld [vmem:[#allocation6 + $0x2b8] sm:$0xff]  ;;  %v3774_v18 = vld [vmem:[%s3343_s21 + $0x140] sm:$0xff] }
  0xdf   : > { %1457 = vmatmul.mubr.f32.gmra.mxu0 %v3714_v5  ;;  %1682 = vmatmul.mubr.f32.gmra.mxu1 %v3749_v17  ;;  %v1245_v5 = vld [vmem:[#allocation6 + $0x3b8] sm:$0xff]  ;;  %4460 = vst [vmem:[#allocation30_spill] sm:$0xff] %v3774_v18 }
  0xe0   : > { %1773 = vmatprep.subr.mxu0 %v3200_v0  ;;  %1998 = vmatprep.subr.mxu1 %v3200_v0  ;;  %v3771_v17 = vld [vmem:[%s3343_s21 + $0x129] sm:$0xff] }
  0xe1   : > { %1774 = vmatpush2.msra.mxu0 %v1214_v28  ;;  %1999 = vmatpush2.msra.mxu1 %v1246_v42  ;;  %4459 = vst [vmem:[#allocation29_spill] sm:$0xff] %v3771_v17  ;;  %v3779_v42 = vld [vmem:[%s3343_s21 + $0x12a] sm:$0xff] }
  0xe2   : > { %1461 = vmatprep.mubr.f32.mxu0 %v3756_v53  ;;  %1686 = vmatprep.mubr.f32.mxu1 %v3759_v43  ;;  %4461 = vst [vmem:[#allocation31_spill] sm:$0xff] %v3779_v42  ;;  %v1212_v28 = vld [vmem:[#allocation6 + $0x2b0] sm:$0xff] }
  0xe3   : > { %1462 = vmatmul.mubr.f32.gmra.mxu0 %v3729_v62  ;;  %1687 = vmatmul.mubr.f32.gmra.mxu1 %v3764_v10  ;;  %v1244_v62 = vld [vmem:[#allocation6 + $0x3b0] sm:$0xff] }
  0xe4   : > { %1775 = vmatprep.subr.mxu0 %v3200_v0  ;;  %2000 = vmatprep.subr.mxu1 %v3200_v0  ;;  %v3786_v10 = vld [vmem:[%s3343_s21 + $0x139] sm:$0xff]  ;;  %v3789_v53 = vld [vmem:[%s3343_s21 + $0x150] sm:$0xff] }
  0xe5   : > { %1776 = vmatpush2.msra.mxu0 %v1213_v57  ;;  %2001 = vmatpush2.msra.mxu1 %v1245_v5  ;;  %4462 = vst [vmem:[#allocation32_spill] sm:$0xff] %v3786_v10  ;;  %4463 = vst [vmem:[#allocation33_spill] sm:$0xff] %v3789_v53  ;;  %v3794_v5 = vld [vmem:[%s3343_s21 + $0x13a] sm:$0xff] }
  0xe6   : > { %1466 = vmatprep.mubr.f32.mxu0 %v3771_v17  ;;  %1691 = vmatprep.mubr.f32.mxu1 %v3774_v18  ;;  %4464 = vst [vmem:[#allocation34_spill] sm:$0xff] %v3794_v5  ;;  %v1211_v57 = vld [vmem:[#allocation6 + $0x2a8] sm:$0xff] }
  0xe7   : > { %1467 = vmatmul.mubr.f32.gmra.mxu0 %v3744_v4  ;;  %1692 = vmatmul.mubr.f32.gmra.mxu1 %v3779_v42  ;;  %v1243_v4 = vld [vmem:[#allocation6 + $0x3a8] sm:$0xff] }
  0xe8   : > { %1777 = vmatprep.subr.mxu0 %v3200_v0  ;;  %2002 = vmatprep.subr.mxu1 %v3200_v0  ;;  %v3801_v42 = vld [vmem:[%s3343_s21 + $0x141] sm:$0xff]  ;;  %v3804_v17 = vld [vmem:[%s3343_s21 + $0x158] sm:$0xff] }
  0xe9   : > { %1778 = vmatpush2.msra.mxu0 %v1212_v28  ;;  %2003 = vmatpush2.msra.mxu1 %v1244_v62  ;;  %4465 = vst [vmem:[#allocation35_spill] sm:$0xff] %v3801_v42  ;;  %4466 = vst [vmem:[#allocation36_spill] sm:$0xff] %v3804_v17  ;;  %v3809_v62 = vld [vmem:[%s3343_s21 + $0x142] sm:$0xff] }
  0xea   : > { %1471 = vmatprep.mubr.f32.mxu0 %v3786_v10  ;;  %1696 = vmatprep.mubr.f32.mxu1 %v3789_v53  ;;  %4467 = vst [vmem:[#allocation37_spill] sm:$0xff] %v3809_v62  ;;  %v1210_v28 = vld [vmem:[#allocation6 + $0x2a0] sm:$0xff]  ;;  %v3819_v10 = vld [vmem:[%s3343_s21 + $0x168] sm:$0xff] }
  0xeb   : > { %1472 = vmatmul.mubr.f32.gmra.mxu0 %v3759_v43  ;;  %1697 = vmatmul.mubr.f32.gmra.mxu1 %v3794_v5  ;;  %v1242_v43 = vld [vmem:[#allocation6 + $0x3a0] sm:$0xff] }
  0xec   : > { %1779 = vmatprep.subr.mxu0 %v3200_v0  ;;  %2004 = vmatprep.subr.mxu1 %v3200_v0  ;;  %v3816_v5 = vld [vmem:[%s3343_s21 + $0x151] sm:$0xff] }
  0xed   : > { %1780 = vmatpush2.msra.mxu0 %v1211_v57  ;;  %2005 = vmatpush2.msra.mxu1 %v1243_v4  ;;  %4468 = vst [vmem:[#allocation38_spill] sm:$0xff] %v3816_v5  ;;  %v3824_v4 = vld [vmem:[%s3343_s21 + $0x152] sm:$0xff] }
  0xee   : > { %1476 = vmatprep.mubr.f32.mxu0 %v3801_v42  ;;  %1701 = vmatprep.mubr.f32.mxu1 %v3804_v17  ;;  %4469 = vst [vmem:[#allocation39_spill] sm:$0xff] %v3824_v4  ;;  %v1209_v57 = vld [vmem:[#allocation6 + $0x298] sm:$0xff]  ;;  %v3834_v42 = vld [vmem:[%s3343_s21 + $0x170] sm:$0xff] }
  0xef   : > { %1477 = vmatmul.mubr.f32.gmra.mxu0 %v3774_v18  ;;  %1702 = vmatmul.mubr.f32.gmra.mxu1 %v3809_v62  ;;  %v1241_v18 = vld [vmem:[#allocation6 + $0x398] sm:$0xff] }
  0xf0   : > { %1781 = vmatprep.subr.mxu0 %v3200_v0  ;;  %2006 = vmatprep.subr.mxu1 %v3200_v0  ;;  %v3831_v62 = vld [vmem:[%s3343_s21 + $0x159] sm:$0xff] }
  0xf1   : > { %1782 = vmatpush2.msra.mxu0 %v1210_v28  ;;  %2007 = vmatpush2.msra.mxu1 %v1242_v43  ;;  %4470 = vst [vmem:[#allocation40_spill] sm:$0xff] %v3831_v62  ;;  %v3839_v43 = vld [vmem:[%s3343_s21 + $0x15a] sm:$0xff] }
  0xf2   : > { %1481 = vmatprep.mubr.f32.mxu0 %v3816_v5  ;;  %1706 = vmatprep.mubr.f32.mxu1 %v3819_v10  ;;  %4471 = vst [vmem:[#allocation41_spill] sm:$0xff] %v3839_v43  ;;  %v1208_v28 = vld [vmem:[#allocation6 + $0x290] sm:$0xff] }
  0xf3   : > { %1482 = vmatmul.mubr.f32.gmra.mxu0 %v3789_v53  ;;  %1707 = vmatmul.mubr.f32.gmra.mxu1 %v3824_v4  ;;  %v1240_v53 = vld [vmem:[#allocation6 + $0x390] sm:$0xff] }
  0xf4   : > { %1783 = vmatprep.subr.mxu0 %v3200_v0  ;;  %2008 = vmatprep.subr.mxu1 %v3200_v0  ;;  %v3846_v4 = vld [vmem:[%s3343_s21 + $0x169] sm:$0xff]  ;;  %v3849_v5 = vld [vmem:[%s3343_s21 + $0x180] sm:$0xff] }
  0xf5   : > { %1784 = vmatpush2.msra.mxu0 %v1209_v57  ;;  %2009 = vmatpush2.msra.mxu1 %v1241_v18  ;;  %4472 = vst [vmem:[#allocation42_spill] sm:$0xff] %v3849_v5  ;;  %v3854_v18 = vld [vmem:[%s3343_s21 + $0x16a] sm:$0xff] }
  0xf6   : > { %1486 = vmatprep.mubr.f32.mxu0 %v3831_v62  ;;  %1711 = vmatprep.mubr.f32.mxu1 %v3834_v42  ;;  %4473 = vst [vmem:[#allocation43_spill] sm:$0xff] %v3854_v18  ;;  %v1207_v57 = vld [vmem:[#allocation6 + $0x288] sm:$0xff] }
  0xf7   : > { %1487 = vmatmul.mubr.f32.gmra.mxu0 %v3804_v17  ;;  %1712 = vmatmul.mubr.f32.gmra.mxu1 %v3839_v43  ;;  %v1239_v17 = vld [vmem:[#allocation6 + $0x388] sm:$0xff] }
  0xf8   : > { %1785 = vmatprep.subr.mxu0 %v3200_v0  ;;  %2010 = vmatprep.subr.mxu1 %v3200_v0  ;;  %v3861_v43 = vld [vmem:[%s3343_s21 + $0x171] sm:$0xff]  ;;  %v3864_v62 = vld [vmem:[%s3343_s21 + $0x188] sm:$0xff] }
  0xf9   : > { %1786 = vmatpush2.msra.mxu0 %v1208_v28  ;;  %2011 = vmatpush2.msra.mxu1 %v1240_v53  ;;  %v3869_v28 = vld [vmem:[%s3343_s21 + $0x172] sm:$0xff] }
  0xfa   : > { %1491 = vmatprep.mubr.f32.mxu0 %v3846_v4  ;;  %1716 = vmatprep.mubr.f32.mxu1 %v3849_v5  ;;  %v1206_v53 = vld [vmem:[#allocation6 + $0x280] sm:$0xff] }
  0xfb   : > { %1492 = vmatmul.mubr.f32.gmra.mxu0 %v3819_v10  ;;  %1717 = vmatmul.mubr.f32.gmra.mxu1 %v3854_v18  ;;  %v1238_v5 = vld [vmem:[#allocation6 + $0x380] sm:$0xff]  ;;  %v1269_v18 = vld [vmem:[#allocation6 + $0x478] sm:$0xff] }
  0xfc   : > { %1787 = vmatprep.subr.mxu0 %v3200_v0  ;;  %2012 = vmatprep.subr.mxu1 %v3200_v0 }
  0xfd   : > { %1788 = vmatpush2.msra.mxu0 %v1207_v57  ;;  %2013 = vmatpush2.msra.mxu1 %v1239_v17  ;;  %v4487_v57 = vld [vmem:[#allocation25_spill] sm:$0xff] }
  0xfe   : > { %1496 = vmatprep.mubr.f32.mxu0 %v3861_v43  ;;  %1721 = vmatprep.mubr.f32.mxu1 %v3864_v62 }
  0xff   : > { %1497 = vmatmul.mubr.f32.gmra.mxu0 %v3834_v42  ;;  %1722 = vmatmul.mubr.f32.gmra.mxu1 %v3869_v28 }
 0x100   : > { %1789 = vmatprep.subr.mxu0 %v3200_v0  ;;  %2014 = vmatprep.subr.mxu1 %v3200_v0  ;;  %v1268_v0 = vld [vmem:[#allocation6 + $0x470] sm:$0xff] }
 0x101   : > { %1790 = vmatpush2.msra.mxu0 %v1206_v53  ;;  %2015 = vmatpush2.msra.mxu1 %v1238_v5  ;;  %v4486_v5 = vld [vmem:[#allocation21_spill] sm:$0xff] }
 0x102   : > { %1791 = vmatprep.mubr.f32.mxu0 %v3436_v16  ;;  %2016 = vmatprep.mubr.f32.mxu1 %v3456_v24  ;;  %v1265_v16 = vld [vmem:[#allocation6 + $0x458] sm:$0xff]  ;;  %v4488_v53 = vld [vmem:[#allocation29_spill] sm:$0xff] }
 0x103   : > { %1792 = vmatmul.mubr.f32.vlgmr.msra.gmra.mxu0 %v3428_v14  ;;  %2017 = vmatmul.mubr.f32.vlgmr.msra.gmra.mxu1 %v3431_v15  ;;  %v1267_v14 = vld [vmem:[#allocation6 + $0x468] sm:$0xff]  ;;  %v1266_v15 = vld [vmem:[#allocation6 + $0x460] sm:$0xff] }
 0x104   : > { %2863 = vmatprep.subr.mxu0 %v1269_v18  ;;  %2943 = vmatprep.subr.mxu1 %v1269_v18 }
 0x105   : > { %2864 = vmatpush3.msra.mxu0 %v1269_v18  ;;  %2959 = vmatpush3.msra.mxu1 %v1269_v18 }
 0x106   : > { %1796 = vmatprep.mubr.f32.mxu0 %v3450_v21  ;;  %2021 = vmatprep.mubr.f32.mxu1 %v3471_v29  ;;  %v1262_v21 = vld [vmem:[#allocation6 + $0x440] sm:$0xff] }
 0x107   : > { %1797 = vmatmul.mubr.f32.gmra.mxu0 %v3442_v19  ;;  %2022 = vmatmul.mubr.f32.gmra.mxu1 %v3445_v20  ;;  %v1264_v19 = vld [vmem:[#allocation6 + $0x450] sm:$0xff]  ;;  %v1263_v20 = vld [vmem:[#allocation6 + $0x448] sm:$0xff] }
 0x108   : > { %1801 = vmatprep.mubr.f32.mxu0 %v3464_v26  ;;  %2026 = vmatprep.mubr.f32.mxu1 %v3486_v34  ;;  %v1259_v26 = vld [vmem:[#allocation6 + $0x428] sm:$0xff] }
 0x109   : > { %2865 = vmatprep.subr.mxu0 %v1268_v0  ;;  %2944 = vmatprep.subr.mxu1 %v1268_v0 }
 0x10a   : > { %2866 = vmatpush3.msra.mxu0 %v1268_v0  ;;  %2960 = vmatpush3.msra.mxu1 %v1268_v0 }
 0x10b   : > { %1802 = vmatmul.mubr.f32.gmra.mxu0 %v3456_v24  ;;  %2027 = vmatmul.mubr.f32.gmra.mxu1 %v3459_v25  ;;  %v1261_v24 = vld [vmem:[#allocation6 + $0x438] sm:$0xff]  ;;  %v1260_v25 = vld [vmem:[#allocation6 + $0x430] sm:$0xff] }
 0x10c   : > { %1806 = vmatprep.mubr.f32.mxu0 %v3479_v31  ;;  %2031 = vmatprep.mubr.f32.mxu1 %v3501_v39  ;;  %v1256_v31 = vld [vmem:[#allocation6 + $0x410] sm:$0xff] }
 0x10d   : > { %2867 = vmatprep.subr.mxu0 %v1267_v14  ;;  %2945 = vmatprep.subr.mxu1 %v1267_v14 }
 0x10e   : > { %2868 = vmatpush3.msra.mxu0 %v1267_v14  ;;  %2961 = vmatpush3.msra.mxu1 %v1267_v14 }
 0x10f   : > { %1807 = vmatmul.mubr.f32.gmra.mxu0 %v3471_v29  ;;  %2032 = vmatmul.mubr.f32.gmra.mxu1 %v3474_v30  ;;  %v1258_v29 = vld [vmem:[#allocation6 + $0x420] sm:$0xff]  ;;  %v1257_v30 = vld [vmem:[#allocation6 + $0x418] sm:$0xff] }
 0x110   : > { %1811 = vmatprep.mubr.f32.mxu0 %v3494_v36  ;;  %2036 = vmatprep.mubr.f32.mxu1 %v3516_v44  ;;  %v3946_v36 = vld [vmem:[%s4389_s2] ss:$0 sm:$0xff] }
 0x111   : > { %2869 = vmatprep.subr.mxu0 %v1266_v15  ;;  %2946 = vmatprep.subr.mxu1 %v1266_v15 }
 0x112   : > { %2870 = vmatpush3.msra.mxu0 %v1266_v15  ;;  %2962 = vmatpush3.msra.mxu1 %v1266_v15 }
 0x113   : > { %1812 = vmatmul.mubr.f32.gmra.mxu0 %v3486_v34  ;;  %2037 = vmatmul.mubr.f32.gmra.mxu1 %v3489_v35  ;;  %v1255_v34 = vld [vmem:[#allocation6 + $0x408] sm:$0xff]  ;;  %v1254_v35 = vld [vmem:[#allocation6 + $0x400] sm:$0xff] }
 0x114   : > { %1816 = vmatprep.mubr.f32.mxu0 %v3509_v41  ;;  %2041 = vmatprep.mubr.f32.mxu1 %v3531_v49  ;;  %v4474_v41 = vld [vmem:[#allocation12_spill] sm:$0xff] }
 0x115   : > { %2871 = vmatprep.subr.mxu0 %v1265_v16  ;;  %2947 = vmatprep.subr.mxu1 %v1265_v16 }
 0x116   : > { %2872 = vmatpush3.msra.mxu0 %v1265_v16  ;;  %2963 = vmatpush3.msra.mxu1 %v1265_v16 }
 0x117   : > { %1817 = vmatmul.mubr.f32.gmra.mxu0 %v3501_v39  ;;  %2042 = vmatmul.mubr.f32.gmra.mxu1 %v3504_v40 }
 0x118   : > { %1821 = vmatprep.mubr.f32.mxu0 %v3524_v46  ;;  %2046 = vmatprep.mubr.f32.mxu1 %v3546_v54  ;;  %v4476_v46 = vld [vmem:[#allocation17_spill] sm:$0xff] }
 0x119   : > { %2873 = vmatprep.subr.mxu0 %v1264_v19  ;;  %2948 = vmatprep.subr.mxu1 %v1264_v19 }
 0x11a   : > { %2874 = vmatpush3.msra.mxu0 %v1264_v19  ;;  %2964 = vmatpush3.msra.mxu1 %v1264_v19 }
 0x11b   : > { %1822 = vmatmul.mubr.f32.gmra.mxu0 %v3516_v44  ;;  %2047 = vmatmul.mubr.f32.gmra.mxu1 %v3519_v45  ;;  %v4475_v45 = vld [vmem:[#allocation14_spill] sm:$0xff] }
 0x11c   : > { %1826 = vmatprep.mubr.f32.mxu0 %v3539_v51  ;;  %2051 = vmatprep.mubr.f32.mxu1 %v3561_v59 }
 0x11d   : > { %2875 = vmatprep.subr.mxu0 %v1263_v20  ;;  %2949 = vmatprep.subr.mxu1 %v1263_v20 }
 0x11e   : > { %2876 = vmatpush3.msra.mxu0 %v1263_v20  ;;  %2965 = vmatpush3.msra.mxu1 %v1263_v20  ;;  %v4489_v20 = vld [vmem:[#allocation24_spill] sm:$0xff] }
 0x11f   : > { %1827 = vmatmul.mubr.f32.gmra.mxu0 %v3531_v49  ;;  %2052 = vmatmul.mubr.f32.gmra.mxu1 %v3534_v50 }
 0x120   : > { %1831 = vmatprep.mubr.f32.mxu0 %v3554_v56  ;;  %2056 = vmatprep.mubr.f32.mxu1 %v3576_v1  ;;  %v4477_v56 = vld [vmem:[#allocation13_spill] sm:$0xff] }
 0x121   : > { %2877 = vmatprep.subr.mxu0 %v1262_v21  ;;  %2950 = vmatprep.subr.mxu1 %v1262_v21 }
 0x122   : > { %2878 = vmatpush3.msra.mxu0 %v1262_v21  ;;  %2966 = vmatpush3.msra.mxu1 %v1262_v21 }
 0x123   : > { %1832 = vmatmul.mubr.f32.gmra.mxu0 %v3546_v54  ;;  %2057 = vmatmul.mubr.f32.gmra.mxu1 %v3549_v55 }
 0x124   : > { %1836 = vmatprep.mubr.f32.mxu0 %v3569_v61  ;;  %2061 = vmatprep.mubr.f32.mxu1 %v3591_v6  ;;  %v4479_v61 = vld [vmem:[#allocation20_spill] sm:$0xff] }
 0x125   : > { %2879 = vmatprep.subr.mxu0 %v1261_v24  ;;  %2951 = vmatprep.subr.mxu1 %v1261_v24 }
 0x126   : > { %2880 = vmatpush3.msra.mxu0 %v1261_v24  ;;  %2967 = vmatpush3.msra.mxu1 %v1261_v24  ;;  %v4490_v24 = vld [vmem:[#allocation28_spill] sm:$0xff] }
 0x127   : > { %1837 = vmatmul.mubr.f32.gmra.mxu0 %v3561_v59  ;;  %2062 = vmatmul.mubr.f32.gmra.mxu1 %v3564_v60  ;;  %v4478_v60 = vld [vmem:[#allocation16_spill] sm:$0xff] }
 0x128   : > { %1841 = vmatprep.mubr.f32.mxu0 %v3584_v3  ;;  %2066 = vmatprep.mubr.f32.mxu1 %v3606_v11 }
 0x129   : > { %2881 = vmatprep.subr.mxu0 %v1260_v25  ;;  %2952 = vmatprep.subr.mxu1 %v1260_v25 }
 0x12a   : > { %2882 = vmatpush3.msra.mxu0 %v1260_v25  ;;  %2968 = vmatpush3.msra.mxu1 %v1260_v25  ;;  %v4491_v25 = vld [vmem:[#allocation32_spill] sm:$0xff] }
 0x12b   : > { %1842 = vmatmul.mubr.f32.gmra.mxu0 %v3576_v1  ;;  %2067 = vmatmul.mubr.f32.gmra.mxu1 %v3579_v2 }
 0x12c   : > { %1846 = vmatprep.mubr.f32.mxu0 %v3599_v8  ;;  %2071 = vmatprep.mubr.f32.mxu1 %v3621_v22  ;;  %v4480_v8 = vld [vmem:[#allocation15_spill] sm:$0xff] }
 0x12d   : > { %2883 = vmatprep.subr.mxu0 %v1259_v26  ;;  %2953 = vmatprep.subr.mxu1 %v1259_v26 }
 0x12e   : > { %2884 = vmatpush3.msra.mxu0 %v1259_v26  ;;  %2969 = vmatpush3.msra.mxu1 %v1259_v26 }
 0x12f   : > { %1847 = vmatmul.mubr.f32.gmra.mxu0 %v3591_v6  ;;  %2072 = vmatmul.mubr.f32.gmra.mxu1 %v3594_v7 }
 0x130   : > { %1851 = vmatprep.mubr.f32.mxu0 %v3614_v13  ;;  %2076 = vmatprep.mubr.f32.mxu1 %v3636_v33  ;;  %v4482_v13 = vld [vmem:[#allocation23_spill] sm:$0xff] }
 0x131   : > { %2885 = vmatprep.subr.mxu0 %v1258_v29  ;;  %2954 = vmatprep.subr.mxu1 %v1258_v29 }
 0x132   : > { %2886 = vmatpush3.msra.mxu0 %v1258_v29  ;;  %2970 = vmatpush3.msra.mxu1 %v1258_v29 }
 0x133   : > { %1852 = vmatmul.mubr.f32.gmra.mxu0 %v3606_v11  ;;  %2077 = vmatmul.mubr.f32.gmra.mxu1 %v3609_v12  ;;  %v4481_v12 = vld [vmem:[#allocation19_spill] sm:$0xff] }
 0x134   : > { %1856 = vmatprep.mubr.f32.mxu0 %v3629_v27  ;;  %2081 = vmatprep.mubr.f32.mxu1 %v3651_v47 }
 0x135   : > { %2887 = vmatprep.subr.mxu0 %v1257_v30  ;;  %2955 = vmatprep.subr.mxu1 %v1257_v30 }
 0x136   : > { %2888 = vmatpush3.msra.mxu0 %v1257_v30  ;;  %2971 = vmatpush3.msra.mxu1 %v1257_v30 }
 0x137   : > { %1857 = vmatmul.mubr.f32.gmra.mxu0 %v3621_v22  ;;  %2082 = vmatmul.mubr.f32.gmra.mxu1 %v3624_v23 }
 0x138   : > { %1861 = vmatprep.mubr.f32.mxu0 %v3644_v38  ;;  %2086 = vmatprep.mubr.f32.mxu1 %v3666_v58  ;;  %v4483_v38 = vld [vmem:[#allocation18_spill] sm:$0xff] }
 0x139   : > { %2889 = vmatprep.subr.mxu0 %v1256_v31  ;;  %2956 = vmatprep.subr.mxu1 %v1256_v31 }
 0x13a   : > { %2890 = vmatpush3.msra.mxu0 %v1256_v31  ;;  %2972 = vmatpush3.msra.mxu1 %v1256_v31 }
 0x13b   : > { %1862 = vmatmul.mubr.f32.gmra.mxu0 %v3636_v33  ;;  %2087 = vmatmul.mubr.f32.gmra.mxu1 %v3639_v37 }
 0x13c   : > { %1866 = vmatprep.mubr.f32.mxu0 %v3659_v52  ;;  %2091 = vmatprep.mubr.f32.mxu1 %v3681_v9  ;;  %v4485_v52 = vld [vmem:[#allocation26_spill] sm:$0xff] }
 0x13d   : > { %2891 = vmatprep.subr.mxu0 %v1255_v34  ;;  %2957 = vmatprep.subr.mxu1 %v1255_v34 }
 0x13e   : > { %2892 = vmatpush3.msra.mxu0 %v1255_v34  ;;  %2973 = vmatpush3.msra.mxu1 %v1255_v34 }
 0x13f   : > { %1867 = vmatmul.mubr.f32.gmra.mxu0 %v3651_v47  ;;  %2092 = vmatmul.mubr.f32.gmra.mxu1 %v3654_v48  ;;  %v4484_v48 = vld [vmem:[#allocation22_spill] sm:$0xff] }
 0x140   : > { %1871 = vmatprep.mubr.f32.mxu0 %v3674_v63  ;;  %2096 = vmatprep.mubr.f32.mxu1 %v3696_v32 }
 0x141   : > { %2893 = vmatprep.subr.mxu0 %v1254_v35  ;;  %2958 = vmatprep.subr.mxu1 %v1254_v35 }
 0x142   : > { %2894 = vmatpush3.msra.mxu0 %v1254_v35  ;;  %2974 = vmatpush3.msra.mxu1 %v1254_v35  ;;  %v4492_v35 = vld [vmem:[#allocation27_spill] sm:$0xff] }
 0x143   : > { %v1343_v39 = vpop.f32.mrf.mxu0  ;;  %v1568_v40 = vpop.f32.mrf.mxu1  ;;  %1872 = vmatmul.mubr.f32.gmra.mxu0 %v3666_v58  ;;  %2097 = vmatmul.mubr.f32.gmra.mxu1 %v4474_v41  ;;  %v4494_v41 = vld [vmem:[#allocation35_spill] sm:$0xff] }
 0x144   : > { %v1344_v44 = vadd.f32 %v3946_v36, %v1343_v39  ;;  %1876 = vmatprep.mubr.f32.mxu0 %v4475_v45  ;;  %2101 = vmatprep.mubr.f32.mxu1 %v4476_v46 }
 0x145   : > { %v1345_v49 = vpop.f32.mrf.mxu0  ;;  %v1570_v50 = vpop.f32.mrf.mxu1 }
 0x146   : > { %v3953_v51 = vadd.f32 %v1568_v40, %v1344_v44  ;;  %v4493_v40 = vld [vmem:[#allocation31_spill] sm:$0xff] }
 0x147   : > { %v1348_v54 = vpop.f32.mrf.mxu0  ;;  %v1573_v55 = vpop.f32.mrf.mxu1  ;;  %1877 = vmatmul.mubr.f32.gmra.mxu0 %v3681_v9  ;;  %2102 = vmatmul.mubr.f32.gmra.mxu1 %v4477_v56  ;;  %v4496_v56 = vld [vmem:[#allocation34_spill] sm:$0xff] }
 0x148   : > { %v1349_v59 = vadd.f32 %v3946_v36, %v1348_v54  ;;  %1881 = vmatprep.mubr.f32.mxu0 %v4478_v60  ;;  %2106 = vmatprep.mubr.f32.mxu1 %v4479_v61  ;;  %v4495_v54 = vld [vmem:[#allocation30_spill] sm:$0xff] }
 0x149   : > { %v1350_v1 = vpop.f32.mrf.mxu0  ;;  %v1575_v2 = vpop.f32.mrf.mxu1 }
 0x14a   : > { %v3960_v3 = vadd.f32 %v1573_v55, %v1349_v59  ;;  %v4497_v59 = vld [vmem:[#allocation38_spill] sm:$0xff] }
 0x14b   : > { %v1353_v6 = vpop.f32.mrf.mxu0  ;;  %v1578_v7 = vpop.f32.mrf.mxu1  ;;  %1882 = vmatmul.mubr.f32.gmra.mxu0 %v3696_v32  ;;  %2107 = vmatmul.mubr.f32.gmra.mxu1 %v4480_v8 }
 0x14c   : > { %v1354_v11 = vadd.f32 %v3946_v36, %v1353_v6  ;;  %1886 = vmatprep.mubr.f32.mxu0 %v4481_v12  ;;  %2111 = vmatprep.mubr.f32.mxu1 %v4482_v13  ;;  %v4500_v12 = vld [vmem:[#allocation40_spill] sm:$0xff] }
 0x14d   : > { %v1355_v22 = vpop.f32.mrf.mxu0  ;;  %v1580_v23 = vpop.f32.mrf.mxu1 }
 0x14e   : > { %v3967_v27 = vadd.f32 %v1578_v7, %v1354_v11  ;;  %v4498_v7 = vld [vmem:[#allocation33_spill] sm:$0xff] }
 0x14f   : > { %v1358_v33 = vpop.f32.mrf.mxu0  ;;  %v1583_v37 = vpop.f32.mrf.mxu1  ;;  %1887 = vmatmul.mubr.f32.gmra.mxu0 %v4476_v46  ;;  %2112 = vmatmul.mubr.f32.gmra.mxu1 %v4483_v38  ;;  %v4499_v11 = vld [vmem:[#allocation37_spill] sm:$0xff]  ;;  %v4501_v38 = vld [vmem:[#allocation36_spill] sm:$0xff] }
 0x150   : > { %v1359_v47 = vadd.f32 %v3946_v36, %v1358_v33  ;;  %1891 = vmatprep.mubr.f32.mxu0 %v4484_v48  ;;  %2116 = vmatprep.mubr.f32.mxu1 %v4485_v52  ;;  %v4502_v48 = vld [vmem:[#allocation39_spill] sm:$0xff] }
 0x151   : > { %v1360_v58 = vpop.f32.mrf.mxu0  ;;  %v1585_v63 = vpop.f32.mrf.mxu1 }
 0x152   : > { %v3974_v9 = vadd.f32 %v1583_v37, %v1359_v47 }
 0x153   : > { %v1363_v32 = vpop.f32.mrf.mxu0  ;;  %v1588_v17 = vpop.f32.mrf.mxu1  ;;  %1892 = vmatmul.mubr.f32.gmra.mxu0 %v4479_v61  ;;  %2117 = vmatmul.mubr.f32.gmra.mxu1 %v4486_v5 }
 0x154   : > { %v1364_v18 = vadd.f32 %v3946_v36, %v1363_v32  ;;  %1896 = vmatprep.mubr.f32.mxu0 %v4487_v57  ;;  %2121 = vmatprep.mubr.f32.mxu1 %v4488_v53 }
 0x155   : > { %v1365_v0 = vpop.f32.mrf.mxu0  ;;  %v1590_v14 = vpop.f32.mrf.mxu1 }
 0x156   : > { %v3981_v15 = vadd.f32 %v1588_v17, %v1364_v18  ;;  %v4503_v18 = vld [vmem:[#allocation41_spill] sm:$0xff] }
 0x157   : > { %v1368_v16 = vpop.f32.mrf.mxu0  ;;  %v1593_v19 = vpop.f32.mrf.mxu1  ;;  %1897 = vmatmul.mubr.f32.gmra.mxu0 %v4482_v13  ;;  %2122 = vmatmul.mubr.f32.gmra.mxu1 %v4489_v20  ;;  %v2772_v0 = vld [vmem:[%s3343_s21 + $0x181] sm:$0xff] }
 0x158   : > { %v1369_v21 = vadd.f32 %v3946_v36, %v1368_v16  ;;  %1901 = vmatprep.mubr.f32.mxu0 %v4490_v24  ;;  %2126 = vmatprep.mubr.f32.mxu1 %v4491_v25  ;;  %v4504_v20 = vld [vmem:[#allocation43_spill] sm:$0xff] }
 0x159   : > { %v1370_v26 = vpop.f32.mrf.mxu0  ;;  %v1595_v29 = vpop.f32.mrf.mxu1 }
 0x15a   : > { %v3988_v30 = vadd.f32 %v1593_v19, %v1369_v21 }
 0x15b   : > { %v1373_v31 = vpop.f32.mrf.mxu0  ;;  %v1598_v34 = vpop.f32.mrf.mxu1  ;;  %1902 = vmatmul.mubr.f32.gmra.mxu0 %v4485_v52  ;;  %2127 = vmatmul.mubr.f32.gmra.mxu1 %v4492_v35 }
 0x15c   : > { %v1374_v39 = vadd.f32 %v3946_v36, %v1373_v31  ;;  %1906 = vmatprep.mubr.f32.mxu0 %v4493_v40  ;;  %2131 = vmatprep.mubr.f32.mxu1 %v4494_v41  ;;  %v4038_v40 = vld [vmem:[%s3343_s21 + $0x182] sm:$0xff] }
 0x15d   : > { %v1375_v44 = vpop.f32.mrf.mxu0  ;;  %v1600_v45 = vpop.f32.mrf.mxu1 }
 0x15e   : > { %v3995_v46 = vadd.f32 %v1598_v34, %v1374_v39  ;;  %v4505_v34 = vld [vmem:[#allocation42_spill] sm:$0xff] }
 0x15f   : > { %v1378_v49 = vpop.f32.mrf.mxu0  ;;  %v1603_v50 = vpop.f32.mrf.mxu1  ;;  %1907 = vmatmul.mubr.f32.gmra.mxu0 %v4488_v53  ;;  %2132 = vmatmul.mubr.f32.gmra.mxu1 %v4495_v54 }
 0x160   : > { %v1379_v55 = vadd.f32 %v3946_v36, %v1378_v49  ;;  %1911 = vmatprep.mubr.f32.mxu0 %v4496_v56  ;;  %2136 = vmatprep.mubr.f32.mxu1 %v4497_v59  ;;  %v2775_v56 = vld [vmem:[%s3343_s21 + $0x1a1] sm:$0xff] }
 0x161   : > { %v1380_v60 = vpop.f32.mrf.mxu0  ;;  %v1605_v61 = vpop.f32.mrf.mxu1 }
 0x162   : > { %v4002_v1 = vadd.f32 %v1603_v50, %v1379_v55  ;;  %v4049_v55 = vld [vmem:[%s3343_s21 + $0x18a] sm:$0xff]  ;;  %v2743_v61 = vld [vmem:[%s3343_s21 + $0x1a0] sm:$0xff] }
 0x163   : > { %v1383_v2 = vpop.f32.mrf.mxu0  ;;  %v1608_v6 = vpop.f32.mrf.mxu1  ;;  %1912 = vmatmul.mubr.f32.gmra.mxu0 %v4491_v25  ;;  %2137 = vmatmul.mubr.f32.gmra.mxu1 %v4498_v7  ;;  %v2773_v25 = vld [vmem:[%s3343_s21 + $0x189] sm:$0xff]  ;;  %v2776_v7 = vld [vmem:[%s3343_s21 + $0x32] sm:$0xff] }
 0x164   : > { %v1384_v8 = vadd.f32 %v3946_v36, %v1383_v2  ;;  %1916 = vmatprep.mubr.f32.mxu0 %v4499_v11  ;;  %2141 = vmatprep.mubr.f32.mxu1 %v4500_v12 }
 0x165   : > { %v1385_v13 = vpop.f32.mrf.mxu0  ;;  %v1610_v22 = vpop.f32.mrf.mxu1 }
 0x166   : > { %v4009_v23 = vadd.f32 %v1608_v6, %v1384_v8  ;;  %v2792_v8 = vld [vmem:[%s3343_s21 + $0xf2] sm:$0xff] }
 0x167   : > { %v1388_v33 = vpop.f32.mrf.mxu0  ;;  %v1613_v37 = vpop.f32.mrf.mxu1  ;;  %1917 = vmatmul.mubr.f32.gmra.mxu0 %v4494_v41  ;;  %2142 = vmatmul.mubr.f32.gmra.mxu1 %v4501_v38  ;;  %v2774_v41 = vld [vmem:[%s3343_s21 + $0x199] sm:$0xff] }
 0x168   : > { %v1389_v47 = vadd.f32 %v3946_v36, %v1388_v33  ;;  %1921 = vmatprep.mubr.f32.mxu0 %v4502_v48  ;;  %2146 = vmatprep.mubr.f32.mxu1 %v3846_v4  ;;  %v2777_v33 = vld [vmem:[%s3343_s21 + $0x3a] sm:$0xff]  ;;  %v2778_v48 = vld [vmem:[%s3343_s21 + $0x4a] sm:$0xff] }
 0x169   : > { %v1390_v52 = vpop.f32.mrf.mxu0  ;;  %v1615_v58 = vpop.f32.mrf.mxu1 }
 0x16a   : > { %v4016_v63 = vadd.f32 %v1613_v37, %v1389_v47  ;;  %v2793_v37 = vld [vmem:[%s3343_s21 + $0xfa] sm:$0xff]  ;;  %v2794_v52 = vld [vmem:[%s3343_s21 + $0x10a] sm:$0xff] }
 0x16b   : > { %v1393_v32 = vpop.f32.mrf.mxu0  ;;  %v1618_v17 = vpop.f32.mrf.mxu1  ;;  %1922 = vmatmul.mubr.f32.gmra.mxu0 %v4497_v59  ;;  %2147 = vmatmul.mubr.f32.gmra.mxu1 %v3819_v10 }
 0x16c   : > { %v1394_v5 = vadd.f32 %v3946_v36, %v1393_v32  ;;  %1926 = vmatprep.mubr.f32.mxu0 %v4503_v18  ;;  %2151 = vmatprep.mubr.f32.mxu1 %v3861_v43  ;;  %v2779_v18 = vld [vmem:[%s3343_s21 + $0x52] sm:$0xff] }
 0x16d   : > { %v1395_v57 = vpop.f32.mrf.mxu0  ;;  %v1620_v53 = vpop.f32.mrf.mxu1 }
 0x16e   : > { %v4024_v14 = vadd.f32 %v1618_v17, %v1394_v5  ;;  %v2795_v57 = vld [vmem:[%s3343_s21 + $0x112] sm:$0xff] }
 0x16f   : > { %v1398_v16 = vpop.f32.mrf.mxu0  ;;  %v1623_v19 = vpop.f32.mrf.mxu1  ;;  %1927 = vmatmul.mubr.f32.gmra.mxu0 %v4500_v12  ;;  %2152 = vmatmul.mubr.f32.gmra.mxu1 %v3834_v42 }
 0x170   : > { %v1399_v10 = vadd.f32 %v3946_v36, %v1398_v16  ;;  %1931 = vmatprep.mubr.f32.mxu0 %v4504_v20  ;;  %2156 = vmatprep.mubr.f32.mxu1 %v2772_v0  ;;  %v2780_v16 = vld [vmem:[%s3343_s21 + $0x62] sm:$0xff] }
 0x171   : > { %v1400_v21 = vpop.f32.mrf.mxu0  ;;  %v1625_v24 = vpop.f32.mrf.mxu1 }
 0x172   : > { %v4031_v26 = vadd.f32 %v1623_v19, %v1399_v10  ;;  %v2796_v19 = vld [vmem:[%s3343_s21 + $0x122] sm:$0xff] }
 0x173   : > { %v1403_v29 = vpop.f32.mrf.mxu0  ;;  %v1628_v31 = vpop.f32.mrf.mxu1  ;;  %1932 = vmatmul.mubr.f32.gmra.mxu0 %v3846_v4  ;;  %2157 = vmatmul.mubr.f32.gmra.mxu1 %v4505_v34 }
 0x174   : > { %v1404_v42 = vadd.f32 %v3946_v36, %v1403_v29  ;;  %1936 = vmatprep.mubr.f32.mxu0 %v3869_v28  ;;  %2161 = vmatprep.mubr.f32.mxu1 %v2773_v25  ;;  %v2742_v28 = vld [vmem:[%s3343_s21 + $0x198] sm:$0xff]  ;;  %v2797_v29 = vld [vmem:[%s3343_s21 + $0x12a] sm:$0xff] }
 0x175   : > { %v1405_v35 = vpop.f32.mrf.mxu0  ;;  %v1630_v39 = vpop.f32.mrf.mxu1 }
 0x176   : > { %v4041_v44 = vadd.f32 %v1628_v31, %v1404_v42  ;;  %v2782_v42 = vld [vmem:[%s3343_s21 + $0x7a] sm:$0xff] }
 0x177   : > { %v1408_v45 = vpop.f32.mrf.mxu0  ;;  %v1633_v49 = vpop.f32.mrf.mxu1  ;;  %1937 = vmatmul.mubr.f32.gmra.mxu0 %v3861_v43  ;;  %2162 = vmatmul.mubr.f32.gmra.mxu1 %v3864_v62  ;;  %v2798_v35 = vld [vmem:[%s3343_s21 + $0x13a] sm:$0xff] }
 0x178   : > { %v1409_v4 = vadd.f32 %v3946_v36, %v1408_v45  ;;  %1941 = vmatprep.mubr.f32.mxu0 %v4038_v40  ;;  %2166 = vmatprep.mubr.f32.mxu1 %v2774_v41 }
 0x179   : > { %v1410_v50 = vpop.f32.mrf.mxu0  ;;  %v1635_v54 = vpop.f32.mrf.mxu1 }
 0x17a   : > { %v4052_v59 = vadd.f32 %v1633_v49, %v1409_v4  ;;  %v2783_v4 = vld [vmem:[%s3343_s21 + $0x82] sm:$0xff] }
 0x17b   : > { %v1413_v60 = vpop.f32.mrf.mxu0  ;;  %v1638_v43 = vpop.f32.mrf.mxu1  ;;  %1942 = vmatmul.mubr.f32.gmra.mxu0 %v2772_v0  ;;  %2167 = vmatmul.mubr.f32.gmra.mxu1 %v2742_v28  ;;  %v2799_v28 = vld [vmem:[%s3343_s21 + $0x142] sm:$0xff] }
 0x17c   : > { %v1414_v62 = vadd.f32 %v3946_v36, %v1413_v60  ;;  %1946 = vmatprep.mubr.f32.mxu0 %v4049_v55  ;;  %2171 = vmatprep.mubr.f32.mxu1 %v2775_v56  ;;  %v2784_v56 = vld [vmem:[%s3343_s21 + $0x92] sm:$0xff] }
 0x17d   : > { %v1415_v2 = vpop.f32.mrf.mxu0  ;;  %v1640_v6 = vpop.f32.mrf.mxu1  ;;  %v2800_v60 = vld [vmem:[%s3343_s21 + $0x152] sm:$0xff] }
 0x17e   : > { %v4059_v11 = vadd.f32 %v1638_v43, %v1414_v62  ;;  %v2785_v6 = vld [vmem:[%s3343_s21 + $0x9a] sm:$0xff] }
 0x17f   : > { %v1418_v12 = vpop.f32.mrf.mxu0  ;;  %v1643_v13 = vpop.f32.mrf.mxu1  ;;  %1947 = vmatmul.mubr.f32.gmra.mxu0 %v2773_v25  ;;  %2172 = vmatmul.mubr.f32.gmra.mxu1 %v2743_v61  ;;  %v2781_v25 = vld [vmem:[%s3343_s21 + $0x6a] sm:$0xff] }
 0x180   : > { %v1419_v22 = vadd.f32 %v3946_v36, %v1418_v12  ;;  %2895 = vmatprep.mubr.f32.mxu0 %v2776_v7  ;;  %2919 = vmatprep.mubr.f32.mxu1 %v2792_v8  ;;  %v2801_v7 = vld [vmem:[%s3343_s21 + $0x15a] sm:$0xff] }
 0x181   : > { %v1420_v38 = vpop.f32.mrf.mxu0  ;;  %v1645_v47 = vpop.f32.mrf.mxu1 }
 0x182   : > { %v4066_v58 = vadd.f32 %v1643_v13, %v1419_v22  ;;  %v2786_v13 = vld [vmem:[%s3343_s21 + $0xaa] sm:$0xff] }
 0x183   : > { %v1423_v32 = vpop.f32.mrf.mxu0  ;;  %v1648_v17 = vpop.f32.mrf.mxu1  ;;  %2896 = vmatmul.mubr.f32.vlgmr.msra.gmra.mxu0 %v2777_v33  ;;  %2920 = vmatmul.mubr.f32.vlgmr.msra.gmra.mxu1 %v2793_v37  ;;  %v2802_v22 = vld [vmem:[%s3343_s21 + $0x16a] sm:$0xff] }
 0x184   : > { %v1424_v5 = vadd.f32 %v3946_v36, %v1423_v32  ;;  %2898 = vmatprep.mubr.f32.mxu0 %v2778_v48  ;;  %2922 = vmatprep.mubr.f32.mxu1 %v2794_v52  ;;  %v2787_v48 = vld [vmem:[%s3343_s21 + $0xb2] sm:$0xff] }
 0x185   : > { %v1425_v53 = vpop.f32.mrf.mxu0  ;;  %v1650_v0 = vpop.f32.mrf.mxu1  ;;  %v2803_v52 = vld [vmem:[%s3343_s21 + $0x172] sm:$0xff] }
 0x186   : > { %v4073_v10 = vadd.f32 %v1648_v17, %v1424_v5  ;;  %v2788_v5 = vld [vmem:[%s3343_s21 + $0xc2] sm:$0xff] }
 0x187   : > { %v1428_v20 = vpop.f32.mrf.mxu0  ;;  %v1653_v21 = vpop.f32.mrf.mxu1  ;;  %2899 = vmatmul.mubr.f32.gmra.mxu0 %v2779_v18  ;;  %2923 = vmatmul.mubr.f32.gmra.mxu1 %v2795_v57 }
 0x188   : > { %v1429_v24 = vadd.f32 %v3946_v36, %v1428_v20  ;;  %2901 = vmatprep.mubr.f32.mxu0 %v2780_v16  ;;  %2925 = vmatprep.mubr.f32.mxu1 %v2796_v19  ;;  %v2789_v16 = vld [vmem:[%s3343_s21 + $0xca] sm:$0xff] }
 0x189   : > { %v1430_v31 = vpop.f32.mrf.mxu0  ;;  %v1655_v34 = vpop.f32.mrf.mxu1 }
 0x18a   : > { %v4080_v39 = vadd.f32 %v1653_v21, %v1429_v24  ;;  %v2790_v21 = vld [vmem:[%s3343_s21 + $0xda] sm:$0xff] }
 0x18b   : > { %v1433_v41 = vpop.f32.mrf.mxu0  ;;  %v1658_v45 = vpop.f32.mrf.mxu1  ;;  %2902 = vmatmul.mubr.f32.gmra.mxu0 %v2781_v25  ;;  %2926 = vmatmul.mubr.f32.gmra.mxu1 %v2797_v29  ;;  %v2806_v24 = vld [vmem:[%s3343_s21 + $0x19a] sm:$0xff] }
 0x18c   : > { %v1434_v49 = vadd.f32 %v3946_v36, %v1433_v41  ;;  %2904 = vmatprep.mubr.f32.mxu0 %v2782_v42  ;;  %2928 = vmatprep.mubr.f32.mxu1 %v2798_v35  ;;  %v2791_v42 = vld [vmem:[%s3343_s21 + $0xe2] sm:$0xff] }
 0x18d   : > { %v1435_v50 = vpop.f32.mrf.mxu0  ;;  %v1660_v54 = vpop.f32.mrf.mxu1  ;;  %v2807_v35 = vld [vmem:[%s3343_s21 + $0x1a2] sm:$0xff] }
 0x18e   : > { %v4087_v43 = vadd.f32 %v1658_v45, %v1434_v49 }
 0x18f   : > { %v1438_v62 = vpop.f32.mrf.mxu0  ;;  %v1663_v61 = vpop.f32.mrf.mxu1  ;;  %2905 = vmatmul.mubr.f32.gmra.mxu0 %v2783_v4  ;;  %2929 = vmatmul.mubr.f32.gmra.mxu1 %v2799_v28 }
 0x190   : > { %v1439_v2 = vadd.f32 %v3946_v36, %v1438_v62  ;;  %2907 = vmatprep.mubr.f32.mxu0 %v2784_v56  ;;  %2931 = vmatprep.mubr.f32.mxu1 %v2800_v60 }
 0x191   : > { %v1440_v8 = vpop.f32.mrf.mxu0  ;;  %v1665_v12 = vpop.f32.mrf.mxu1 }
 0x192   : > { %v4094_v33 = vadd.f32 %v1663_v61, %v1439_v2 }
 0x193   : > { %v1443_v37 = vpop.f32.mrf.mxu0  ;;  %v1668_v38 = vpop.f32.mrf.mxu1  ;;  %2908 = vmatmul.mubr.f32.gmra.mxu0 %v2785_v6  ;;  %2932 = vmatmul.mubr.f32.gmra.mxu1 %v2801_v7 }
 0x194   : > { %v1444_v47 = vadd.f32 %v3946_v36, %v1443_v37  ;;  %2910 = vmatprep.mubr.f32.mxu0 %v2786_v13  ;;  %2934 = vmatprep.mubr.f32.mxu1 %v2802_v22 }
 0x195   : > { %v1445_v32 = vpop.f32.mrf.mxu0  ;;  %v1670_v17 = vpop.f32.mrf.mxu1 }
 0x196   : > { %v4100_v18 = vadd.f32 %v1668_v38, %v1444_v47 }
 0x197   : > { %v1448_v57 = vpop.f32.mrf.mxu0  ;;  %v1673_v53 = vpop.f32.mrf.mxu1  ;;  %2911 = vmatmul.mubr.f32.gmra.mxu0 %v2787_v48  ;;  %2935 = vmatmul.mubr.f32.gmra.mxu1 %v2803_v52 }
 0x198   : > { %v1449_v0 = vadd.f32 %v3946_v36, %v1448_v57  ;;  %2913 = vmatprep.mubr.f32.mxu0 %v2788_v5  ;;  %2937 = vmatprep.mubr.f32.mxu1 %v4038_v40 }
 0x199   : > { %v1450_v19 = vpop.f32.mrf.mxu0  ;;  %v1675_v20 = vpop.f32.mrf.mxu1 }
 0x19a   : > { %v4107_v25 = vadd.f32 %v1673_v53, %v1449_v0 }
 0x19b   : > { %v1453_v29 = vpop.f32.mrf.mxu0  ;;  %v1678_v31 = vpop.f32.mrf.mxu1  ;;  %2914 = vmatmul.mubr.f32.gmra.mxu0 %v2789_v16  ;;  %2938 = vmatmul.mubr.f32.gmra.mxu1 %v4049_v55 }
 0x19c   : > { %v1454_v34 = vadd.f32 %v3946_v36, %v1453_v29  ;;  %2916 = vmatprep.mubr.f32.mxu0 %v2790_v21  ;;  %2940 = vmatprep.mubr.f32.mxu1 %v2806_v24 }
 0x19d   : > { %v1455_v41 = vpop.f32.mrf.mxu0  ;;  %v1680_v40 = vpop.f32.mrf.mxu1 }
 0x19e   : > { %v4113_v45 = vadd.f32 %v1678_v31, %v1454_v34 }
 0x19f   : > { %v1458_v49 = vpop.f32.mrf.mxu0  ;;  %v1683_v4 = vpop.f32.mrf.mxu1  ;;  %2917 = vmatmul.mubr.f32.gmra.mxu0 %v2791_v42  ;;  %2941 = vmatmul.mubr.f32.gmra.mxu1 %v2807_v35 }
 0x1a0   : > { %v1459_v28 = vadd.f32 %v3946_v36, %v1458_v49 }
 0x1a1   : > { %v1460_v50 = vpop.f32.mrf.mxu0  ;;  %v1685_v54 = vpop.f32.mrf.mxu1 }
 0x1a2   : > { %v4116_v56 = vadd.f32 %v1683_v4, %v1459_v28 }
 0x1a3   : > { %v1463_v55 = vpop.f32.mrf.mxu0  ;;  %v1688_v60 = vpop.f32.mrf.mxu1 }
 0x1a4   : > { %v1464_v62 = vadd.f32 %v3946_v36, %v1463_v55 }
 0x1a5   : > { %v1465_v61 = vpop.f32.mrf.mxu0  ;;  %v1690_v2 = vpop.f32.mrf.mxu1 }
 0x1a6   : > { %v4119_v6 = vadd.f32 %v1688_v60, %v1464_v62 }
 0x1a7   : > { %v1468_v7 = vpop.f32.mrf.mxu0  ;;  %v1693_v8 = vpop.f32.mrf.mxu1 }
 0x1a8   : > { %v1469_v12 = vadd.f32 %v3946_v36, %v1468_v7 }
 0x1a9   : > { %v1470_v13 = vpop.f32.mrf.mxu0  ;;  %v1695_v22 = vpop.f32.mrf.mxu1 }
 0x1aa   : > { %v4122_v37 = vadd.f32 %v1693_v8, %v1469_v12 }
 0x1ab   : > { %v1473_v38 = vpop.f32.mrf.mxu0  ;;  %v1698_v47 = vpop.f32.mrf.mxu1 }
 0x1ac   : > { %v1474_v48 = vadd.f32 %v3946_v36, %v1473_v38 }
 0x1ad   : > { %v1475_v52 = vpop.f32.mrf.mxu0  ;;  %v1700_v32 = vpop.f32.mrf.mxu1 }
 0x1ae   : > { %v4125_v17 = vadd.f32 %v1698_v47, %v1474_v48 }
 0x1af   : > { %v1478_v5 = vpop.f32.mrf.mxu0  ;;  %v1703_v57 = vpop.f32.mrf.mxu1 }
 0x1b0   : > { %v1479_v53 = vadd.f32 %v3946_v36, %v1478_v5 }
 0x1b1   : > { %v1480_v0 = vpop.f32.mrf.mxu0  ;;  %v1705_v16 = vpop.f32.mrf.mxu1 }
 0x1b2   : > { %v4128_v19 = vadd.f32 %v1703_v57, %v1479_v53 }
 0x1b3   : > { %v1483_v20 = vpop.f32.mrf.mxu0  ;;  %v1708_v21 = vpop.f32.mrf.mxu1 }
 0x1b4   : > { %v1484_v24 = vadd.f32 %v3946_v36, %v1483_v20 }
 0x1b5   : > { %v1485_v29 = vpop.f32.mrf.mxu0  ;;  %v1710_v31 = vpop.f32.mrf.mxu1 }
 0x1b6   : > { %v4131_v34 = vadd.f32 %v1708_v21, %v1484_v24 }
 0x1b7   : > { %v1488_v42 = vpop.f32.mrf.mxu0  ;;  %v1713_v35 = vpop.f32.mrf.mxu1 }
 0x1b8   : > { %v1489_v41 = vadd.f32 %v3946_v36, %v1488_v42 }
 0x1b9   : > { %v1490_v40 = vpop.f32.mrf.mxu0  ;;  %v1715_v49 = vpop.f32.mrf.mxu1 }
 0x1ba   : > { %v4134_v4 = vadd.f32 %v1713_v35, %v1489_v41 }
 0x1bb   : > { %v1493_v28 = vpop.f32.mrf.mxu0  ;;  %v1718_v50 = vpop.f32.mrf.mxu1 }
 0x1bc   : > { %v1494_v54 = vadd.f32 %v3946_v36, %v1493_v28 }
 0x1bd   : > { %v1495_v55 = vpop.f32.mrf.mxu0  ;;  %v1720_v60 = vpop.f32.mrf.mxu1 }
 0x1be   : > { %v4137_v62 = vadd.f32 %v1718_v50, %v1494_v54 }
 0x1bf   : > { %v1498_v61 = vpop.f32.mrf.mxu0  ;;  %v1723_v2 = vpop.f32.mrf.mxu1 }
 0x1c0   : > { %4506 = vst [vmem:[#allocation12_spill] sm:$0xff] %v4137_v62  ;;  %v1499_v7 = vadd.f32 %v3946_v36, %v1498_v61 }
 0x1c1   : > { %v1500_v8 = vpop.f32.mrf.mxu0  ;;  %v1725_v12 = vpop.f32.mrf.mxu1 }
 0x1c2   : > { %v4140_v13 = vadd.f32 %v1723_v2, %v1499_v7 }
 0x1c3   : > { %v1793_v22 = vpop.f32.mrf.mxu0  ;;  %v2018_v38 = vpop.f32.mrf.mxu1 }
 0x1c4   : > { %4507 = vst [vmem:[#allocation14_spill] sm:$0xff] %v4140_v13  ;;  %v1794_v47 = vadd.f32 %v1793_v22, %v3953_v51 }
 0x1c5   : > { %v1795_v48 = vpop.f32.mrf.mxu0  ;;  %v2020_v52 = vpop.f32.mrf.mxu1 }
 0x1c6   : > { %v4143_v32 = vadd.f32 %v2018_v38, %v1794_v47 }
 0x1c7   : > { %v1798_v5 = vpop.f32.mrf.mxu0  ;;  %v2023_v57 = vpop.f32.mrf.mxu1 }
 0x1c8   : > { %v1799_v53 = vadd.f32 %v1798_v5, %v3960_v3 }
 0x1c9   : > { %v1800_v0 = vpop.f32.mrf.mxu0  ;;  %v2025_v16 = vpop.f32.mrf.mxu1 }
 0x1ca   : > { %v4146_v20 = vadd.f32 %v2023_v57, %v1799_v53 }
 0x1cb   : > { %v1803_v36 = vpop.f32.mrf.mxu0  ;;  %v2028_v21 = vpop.f32.mrf.mxu1 }
 0x1cc   : > { %v1804_v24 = vadd.f32 %v1803_v36, %v3967_v27 }
 0x1cd   : > { %v1805_v29 = vpop.f32.mrf.mxu0  ;;  %v2030_v31 = vpop.f32.mrf.mxu1 }
 0x1ce   : > { %v4149_v42 = vadd.f32 %v2028_v21, %v1804_v24 }
 0x1cf   : > { %v1808_v51 = vpop.f32.mrf.mxu0  ;;  %v2033_v35 = vpop.f32.mrf.mxu1 }
 0x1d0   : > { %v1809_v41 = vadd.f32 %v1808_v51, %v3974_v9 }
 0x1d1   : > { %v1810_v40 = vpop.f32.mrf.mxu0  ;;  %v2035_v49 = vpop.f32.mrf.mxu1 }
 0x1d2   : > { %v4152_v28 = vadd.f32 %v2033_v35, %v1809_v41 }
 0x1d3   : > { %v1813_v3 = vpop.f32.mrf.mxu0  ;;  %v2038_v50 = vpop.f32.mrf.mxu1 }
 0x1d4   : > { %v1814_v54 = vadd.f32 %v1813_v3, %v3981_v15 }
 0x1d5   : > { %v1815_v55 = vpop.f32.mrf.mxu0  ;;  %v2040_v60 = vpop.f32.mrf.mxu1 }
 0x1d6   : > { %v4155_v61 = vadd.f32 %v2038_v50, %v1814_v54 }
 0x1d7   : > { %v1818_v27 = vpop.f32.mrf.mxu0  ;;  %v2043_v2 = vpop.f32.mrf.mxu1 }
 0x1d8   : > { %v1819_v7 = vadd.f32 %v1818_v27, %v3988_v30 }
 0x1d9   : > { %v1820_v8 = vpop.f32.mrf.mxu0  ;;  %v2045_v12 = vpop.f32.mrf.mxu1 }
 0x1da   : > { %v4158_v22 = vadd.f32 %v2043_v2, %v1819_v7 }
 0x1db   : > { %v1823_v9 = vpop.f32.mrf.mxu0  ;;  %v2048_v38 = vpop.f32.mrf.mxu1 }
 0x1dc   : > { %v1824_v47 = vadd.f32 %v1823_v9, %v3995_v46 }
 0x1dd   : > { %v1825_v48 = vpop.f32.mrf.mxu0  ;;  %v2050_v52 = vpop.f32.mrf.mxu1 }
 0x1de   : > { %v4161_v5 = vadd.f32 %v2048_v38, %v1824_v47 }
 0x1df   : > { %v1828_v15 = vpop.f32.mrf.mxu0  ;;  %v2053_v57 = vpop.f32.mrf.mxu1 }
 0x1e0   : > { %v1829_v53 = vadd.f32 %v1828_v15, %v4002_v1 }
 0x1e1   : > { %v1830_v0 = vpop.f32.mrf.mxu0  ;;  %v2055_v16 = vpop.f32.mrf.mxu1 }
 0x1e2   : > { %v4164_v36 = vadd.f32 %v2053_v57, %v1829_v53 }
 0x1e3   : > { %v1833_v30 = vpop.f32.mrf.mxu0  ;;  %v2058_v21 = vpop.f32.mrf.mxu1 }
 0x1e4   : > { %v1834_v24 = vadd.f32 %v1833_v30, %v4009_v23 }
 0x1e5   : > { %v1835_v29 = vpop.f32.mrf.mxu0  ;;  %v2060_v31 = vpop.f32.mrf.mxu1 }
 0x1e6   : > { %v4167_v51 = vadd.f32 %v2058_v21, %v1834_v24 }
 0x1e7   : > { %v1838_v46 = vpop.f32.mrf.mxu0  ;;  %v2063_v35 = vpop.f32.mrf.mxu1 }
 0x1e8   : > { %v1839_v41 = vadd.f32 %v1838_v46, %v4016_v63 }
 0x1e9   : > { %v1840_v40 = vpop.f32.mrf.mxu0  ;;  %v2065_v49 = vpop.f32.mrf.mxu1 }
 0x1ea   : > { %v4170_v3 = vadd.f32 %v2063_v35, %v1839_v41 }
 0x1eb   : > { %v1843_v1 = vpop.f32.mrf.mxu0  ;;  %v2068_v50 = vpop.f32.mrf.mxu1 }
 0x1ec   : > { %v1844_v54 = vadd.f32 %v1843_v1, %v4024_v14 }
 0x1ed   : > { %v1845_v55 = vpop.f32.mrf.mxu0  ;;  %v2070_v60 = vpop.f32.mrf.mxu1 }
 0x1ee   : > { %v4173_v27 = vadd.f32 %v2068_v50, %v1844_v54 }
 0x1ef   : > { %v1848_v23 = vpop.f32.mrf.mxu0  ;;  %v2073_v2 = vpop.f32.mrf.mxu1 }
 0x1f0   : > { %4508 = vst [vmem:[#allocation17_spill] sm:$0xff] %v4173_v27  ;;  %v1849_v7 = vadd.f32 %v1848_v23, %v4031_v26 }
 0x1f1   : > { %v1850_v8 = vpop.f32.mrf.mxu0  ;;  %v2075_v12 = vpop.f32.mrf.mxu1 }
 0x1f2   : > { %v4176_v9 = vadd.f32 %v2073_v2, %v1849_v7 }
 0x1f3   : > { %v1853_v63 = vpop.f32.mrf.mxu0  ;;  %v2078_v38 = vpop.f32.mrf.mxu1 }
 0x1f4   : > { %v1854_v47 = vadd.f32 %v1853_v63, %v4041_v44 }
 0x1f5   : > { %v1855_v48 = vpop.f32.mrf.mxu0  ;;  %v2080_v52 = vpop.f32.mrf.mxu1 }
 0x1f6   : > { %v4179_v15 = vadd.f32 %v2078_v38, %v1854_v47 }
 0x1f7   : > { %v1858_v14 = vpop.f32.mrf.mxu0  ;;  %v2083_v57 = vpop.f32.mrf.mxu1 }
 0x1f8   : > { %4509 = vst [vmem:[#allocation13_spill] sm:$0xff] %v4179_v15  ;;  %v1859_v53 = vadd.f32 %v1858_v14, %v4052_v59 }
 0x1f9   : > { %v1860_v0 = vpop.f32.mrf.mxu0  ;;  %v2085_v16 = vpop.f32.mrf.mxu1 }
 0x1fa   : > { %v4182_v30 = vadd.f32 %v2083_v57, %v1859_v53 }
 0x1fb   : > { %v1863_v26 = vpop.f32.mrf.mxu0  ;;  %v2088_v21 = vpop.f32.mrf.mxu1 }
 0x1fc   : > { %4510 = vst [vmem:[#allocation16_spill] sm:$0xff] %v4182_v30  ;;  %v1864_v24 = vadd.f32 %v1863_v26, %v4059_v11 }
 0x1fd   : > { %v1865_v29 = vpop.f32.mrf.mxu0  ;;  %v2090_v31 = vpop.f32.mrf.mxu1 }
 0x1fe   : > { %v4185_v46 = vadd.f32 %v2088_v21, %v1864_v24 }
 0x1ff   : > { %v1868_v44 = vpop.f32.mrf.mxu0  ;;  %v2093_v35 = vpop.f32.mrf.mxu1 }
 0x200   : > { %4511 = vst [vmem:[#allocation20_spill] sm:$0xff] %v4185_v46  ;;  %v1869_v41 = vadd.f32 %v1868_v44, %v4066_v58 }
 0x201   : > { %v1870_v40 = vpop.f32.mrf.mxu0  ;;  %v2095_v49 = vpop.f32.mrf.mxu1 }
 0x202   : > { %v4188_v1 = vadd.f32 %v2093_v35, %v1869_v41 }
 0x203   : > { %v1873_v59 = vpop.f32.mrf.mxu0  ;;  %v2098_v50 = vpop.f32.mrf.mxu1 }
 0x204   : > { %4512 = vst [vmem:[#allocation15_spill] sm:$0xff] %v4188_v1  ;;  %v1874_v54 = vadd.f32 %v1873_v59, %v4073_v10 }
 0x205   : > { %v1875_v55 = vpop.f32.mrf.mxu0  ;;  %v2100_v60 = vpop.f32.mrf.mxu1 }
 0x206   : > { %v4191_v23 = vadd.f32 %v2098_v50, %v1874_v54 }
 0x207   : > { %v1878_v11 = vpop.f32.mrf.mxu0  ;;  %v2103_v2 = vpop.f32.mrf.mxu1 }
 0x209   : > { %v1880_v7 = vpop.f32.mrf.mxu0  ;;  %v2105_v8 = vpop.f32.mrf.mxu1 }
 0x20b   : > { %v1883_v12 = vpop.f32.mrf.mxu0  ;;  %v4193_v63 = vpop.f32.mrf.mxu1 }
 0x20d   : > { %v1885_v58 = vpop.f32.mrf.mxu0  ;;  %v2110_v38 = vpop.f32.mrf.mxu1 }
 0x20f   : > { %v1888_v47 = vpop.f32.mrf.mxu0  ;;  %v2113_v48 = vpop.f32.mrf.mxu1 }
 0x211   : > { %v1890_v52 = vpop.f32.mrf.mxu0  ;;  %v2115_v14 = vpop.f32.mrf.mxu1 }
 0x213   : > { %v4195_v57 = vpop.f32.mrf.mxu0  ;;  %v4197_v10 = vpop.f32.mrf.mxu1 }
 0x215   : > { %v1895_v53 = vpop.f32.mrf.mxu0  ;;  %v2120_v0 = vpop.f32.mrf.mxu1 }
 0x217   : > { %v1898_v16 = vpop.f32.mrf.mxu0  ;;  %v4199_v26 = vpop.f32.mrf.mxu1 }
 0x219   : > { %v1900_v21 = vpop.f32.mrf.mxu0  ;;  %v2125_v24 = vpop.f32.mrf.mxu1 }
 0x21b   : > { %v4201_v29 = vpop.f32.mrf.mxu0  ;;  %v4203_v31 = vpop.f32.mrf.mxu1 }
 0x21d   : > { %v1905_v44 = vpop.f32.mrf.mxu0  ;;  %v2130_v35 = vpop.f32.mrf.mxu1 }
 0x21f   : > { %v4205_v41 = vpop.f32.mrf.mxu0  ;;  %v4207_v40 = vpop.f32.mrf.mxu1 }
 0x221   : > { %v1910_v49 = vpop.f32.mrf.mxu0  ;;  %v2135_v59 = vpop.f32.mrf.mxu1 }
 0x223   : > { %v4209_v50 = vpop.f32.mrf.mxu0  ;;  %v4211_v54 = vpop.f32.mrf.mxu1 }
 0x225   : > { %v1915_v55 = vpop.f32.mrf.mxu0  ;;  %v2140_v60 = vpop.f32.mrf.mxu1 }
 0x227   : > { %v4213_v7 = vpop.f32.mrf.mxu0  ;;  %v4215_v8 = vpop.f32.mrf.mxu1 }
 0x229   : > { %v1920_v58 = vpop.f32.mrf.mxu0  ;;  %v2145_v38 = vpop.f32.mrf.mxu1 }
 0x22b   : > { %v4217_v52 = vpop.f32.mrf.mxu0  ;;  %v4219_v14 = vpop.f32.mrf.mxu1 }
 0x22d   : > { %v1925_v53 = vpop.f32.mrf.mxu0  ;;  %v2150_v0 = vpop.f32.mrf.mxu1 }
 0x22f   : > { %v4221_v21 = vpop.f32.mrf.mxu0  ;;  %v4223_v24 = vpop.f32.mrf.mxu1 }
 0x231   : > { %v1930_v44 = vpop.f32.mrf.mxu0  ;;  %v2155_v35 = vpop.f32.mrf.mxu1 }
 0x232   : > { %v1879_v35 = vadd.f32 %v1878_v11, %v4080_v39  ;;  %v1899_v39 = vadd.f32 %v1898_v16, %v4107_v25 }
 0x233   : > { %v4225_v49 = vpop.f32.mrf.mxu0  ;;  %v4227_v59 = vpop.f32.mrf.mxu1 }
 0x234   : > { %4513 = vst [vmem:[#allocation19_spill] sm:$0xff] %v4227_v59  ;;  %v2104_v27 = vadd.f32 %v2103_v2, %v1879_v35 }
 0x235   : > { %v1935_v55 = vpop.f32.mrf.mxu0  ;;  %v2160_v60 = vpop.f32.mrf.mxu1 }
 0x236   : > { %v1889_v55 = vadd.f32 %v1888_v47, %v4094_v33 }
 0x237   : > { %v4229_v58 = vpop.f32.mrf.mxu0  ;;  %v4231_v38 = vpop.f32.mrf.mxu1 }
 0x239   : > { %v1940_v46 = vpop.f32.mrf.mxu0  ;;  %v2165_v53 = vpop.f32.mrf.mxu1 }
 0x23a   : > { %v1884_v46 = vadd.f32 %v1883_v12, %v4087_v43  ;;  %v1894_v43 = vadd.f32 %v4195_v57, %v4100_v18  ;;  %v1909_v18 = vadd.f32 %v4205_v41, %v4116_v56  ;;  %v1904_v57 = vadd.f32 %v4201_v29, %v4113_v45 }
 0x23b   : > { %v4233_v0 = vpop.f32.mrf.mxu0  ;;  %v4235_v1 = vpop.f32.mrf.mxu1 }
 0x23c   : > { %4514 = vst [vmem:[#allocation23_spill] sm:$0xff] %v4233_v0  ;;  %4515 = vst [vmem:[#allocation18_spill] sm:$0xff] %v4235_v1  ;;  %v2109_v2 = vadd.f32 %v4193_v63, %v1884_v46 }
 0x23d   : > { %v1945_v15 = vpop.f32.mrf.mxu0  ;;  %v2170_v44 = vpop.f32.mrf.mxu1 }
 0x23e   : > { %v2114_v44 = vadd.f32 %v2113_v48, %v1889_v55  ;;  %v1919_v55 = vadd.f32 %v4213_v7, %v4122_v37 }
 0x23f   : > { %v4238_v30 = vpop.f32.mrf.mxu0  ;;  %v4240_v62 = vpop.f32.mrf.mxu1 }
 0x240   : > { %4516 = vst [vmem:[#allocation22_spill] sm:$0xff] %v4238_v30  ;;  %4517 = vst [vmem:[#allocation26_spill] sm:$0xff] %v4240_v62 }
 0x241   : > { %v1950_v60 = vpop.f32.mrf.mxu0  ;;  %v2175_v59 = vpop.f32.mrf.mxu1 }
 0x243   : > { %v2897_v53 = vpop.f32.mrf.mxu0  ;;  %v2921_v0 = vpop.f32.mrf.mxu1 }
 0x244   : > { %v2249_v1 = vadd.f32 %v2897_v53, %v4146_v20  ;;  %v2329_v15 = vadd.f32 %v2921_v0, %v2104_v27 }
 0x245   : > { %v2243_v11 = vpop.f32.mrf.mxu0  ;;  %v2323_v30 = vpop.f32.mrf.mxu1 }
 0x246   : > { %v2403_v13 = vmax.f32 %v2249_v1, 0.0  ;;  %v2419_v62 = vmax.f32 %v2329_v15, 0.0  ;;  %v2244_v33 = vadd.f32 %v2243_v11, %v4143_v32  ;;  %v2324_v47 = vadd.f32 %v2323_v30, %v4191_v23 }
 0x247   : > { %v2900_v12 = vpop.f32.mrf.mxu0  ;;  %v2924_v59 = vpop.f32.mrf.mxu1  ;;  %v2124_v30 = vadd.f32 %v4199_v26, %v1899_v39  ;;  %v1914_v15 = vadd.f32 %v4209_v50, %v4119_v6 }
 0x248   : > { %2435 = vst [vmem:[%s4252_s30 + $0x8] sm:$0xff] %v2403_v13  ;;  %2451 = vst [vmem:[%s4252_s30 + $0x88] sm:$0xff] %v2419_v62  ;;  %v2402_v25 = vmax.f32 %v2244_v33, 0.0  ;;  %v2418_v20 = vmax.f32 %v2324_v47, 0.0  ;;  %v2259_v32 = vadd.f32 %v2900_v12, %v4152_v28  ;;  %v2339_v27 = vadd.f32 %v2924_v59, %v2114_v44 }
 0x249   : > { %v2253_v1 = vpop.f32.mrf.mxu0  ;;  %v2333_v23 = vpop.f32.mrf.mxu1  ;;  %v2119_v28 = vadd.f32 %v4197_v10, %v1894_v43  ;;  %v1929_v33 = vadd.f32 %v4221_v21, %v4128_v19  ;;  %v1924_v12 = vadd.f32 %v4217_v52, %v4125_v17 }
 0x24a   : > { %2434 = vst [vmem:[%s4252_s30] sm:$0xff] %v2402_v25  ;;  %2450 = vst [vmem:[%s4252_s30 + $0x80] sm:$0xff] %v2418_v20  ;;  %v2405_v63 = vmax.f32 %v2259_v32, 0.0  ;;  %v2421_v48 = vmax.f32 %v2339_v27, 0.0  ;;  %v2254_v62 = vadd.f32 %v2253_v1, %v4149_v42  ;;  %v2334_v13 = vadd.f32 %v2333_v23, %v2109_v2 }
 0x24b   : > { %v2903_v16 = vpop.f32.mrf.mxu0  ;;  %v2927_v26 = vpop.f32.mrf.mxu1  ;;  %v2134_v42 = vadd.f32 %v4207_v40, %v1909_v18  ;;  %v1939_v32 = vadd.f32 %v4229_v58, %v4134_v4  ;;  %v1934_v1 = vadd.f32 %v4225_v49, %v4131_v34 }
 0x24c   : > { %2437 = vst [vmem:[%s4252_s30 + $0x18] sm:$0xff] %v2405_v63  ;;  %2453 = vst [vmem:[%s4252_s30 + $0x98] sm:$0xff] %v2421_v48  ;;  %v2404_v56 = vmax.f32 %v2254_v62, 0.0  ;;  %v2420_v41 = vmax.f32 %v2334_v13, 0.0  ;;  %v2269_v0 = vadd.f32 %v2903_v16, %v4158_v22  ;;  %v2349_v35 = vadd.f32 %v2927_v26, %v2124_v30  ;;  %v4518_v62 = vld [vmem:[#allocation14_spill] sm:$0xff]  ;;  %v4520_v16 = vld [vmem:[#allocation17_spill] sm:$0xff] }
 0x24d   : > { %v2263_v10 = vpop.f32.mrf.mxu0  ;;  %v2343_v60 = vpop.f32.mrf.mxu1  ;;  %v2129_v22 = vadd.f32 %v4203_v31, %v1904_v57  ;;  %v4519_v13 = vld [vmem:[#allocation22_spill] sm:$0xff] }
 0x24e   : > { %2436 = vst [vmem:[%s4252_s30 + $0x10] sm:$0xff] %v2404_v56  ;;  %2452 = vst [vmem:[%s4252_s30 + $0x90] sm:$0xff] %v2420_v41  ;;  %v2407_v45 = vmax.f32 %v2269_v0, 0.0  ;;  %v2423_v29 = vmax.f32 %v2349_v35, 0.0  ;;  %v2264_v46 = vadd.f32 %v2263_v10, %v4155_v61  ;;  %v2344_v53 = vadd.f32 %v2343_v60, %v2119_v28  ;;  %v4522_v0 = vld [vmem:[#allocation12_spill] sm:$0xff]  ;;  %v4523_v35 = vld [vmem:[#allocation23_spill] sm:$0xff] }
 0x24f   : > { %v2906_v40 = vpop.f32.mrf.mxu0  ;;  %v2930_v44 = vpop.f32.mrf.mxu1  ;;  %v2144_v61 = vadd.f32 %v4215_v8, %v1919_v55  ;;  %v1949_v28 = vadd.f32 %v4519_v13, %v4518_v62 }
 0x250   : > { %2439 = vst [vmem:[%s4252_s30 + $0x28] sm:$0xff] %v2407_v45  ;;  %2455 = vst [vmem:[%s4252_s30 + $0xa8] sm:$0xff] %v2423_v29  ;;  %v2406_v37 = vmax.f32 %v2264_v46, 0.0  ;;  %v2422_v7 = vmax.f32 %v2344_v53, 0.0  ;;  %v2279_v39 = vadd.f32 %v2906_v40, %v4164_v36  ;;  %v2359_v11 = vadd.f32 %v2930_v44, %v2134_v42  ;;  %v4524_v45 = vld [vmem:[#allocation16_spill] sm:$0xff]  ;;  %v4525_v53 = vld [vmem:[#allocation26_spill] sm:$0xff] }
 0x251   : > { %v2273_v31 = vpop.f32.mrf.mxu0  ;;  %v2353_v47 = vpop.f32.mrf.mxu1  ;;  %v2139_v36 = vadd.f32 %v4211_v54, %v1914_v15  ;;  %v1944_v42 = vadd.f32 %v4523_v35, %v4522_v0 }
 0x252   : > { %2438 = vst [vmem:[%s4252_s30 + $0x20] sm:$0xff] %v2406_v37  ;;  %2454 = vst [vmem:[%s4252_s30 + $0xa0] sm:$0xff] %v2422_v7  ;;  %v2409_v6 = vmax.f32 %v2279_v39, 0.0  ;;  %v2425_v50 = vmax.f32 %v2359_v11, 0.0  ;;  %v2274_v2 = vadd.f32 %v2273_v31, %v4161_v5  ;;  %v2354_v43 = vadd.f32 %v2353_v47, %v2129_v22  ;;  %v4526_v7 = vld [vmem:[#allocation13_spill] sm:$0xff] }
 0x253   : > { %v2909_v8 = vpop.f32.mrf.mxu0  ;;  %v2933_v59 = vpop.f32.mrf.mxu1  ;;  %v2154_v5 = vadd.f32 %v4223_v24, %v1929_v33  ;;  %v2174_v22 = vadd.f32 %v4525_v53, %v1949_v28 }
 0x254   : > { %2441 = vst [vmem:[%s4252_s30 + $0x38] sm:$0xff] %v2409_v6  ;;  %2457 = vst [vmem:[%s4252_s30 + $0xb8] sm:$0xff] %v2425_v50  ;;  %v2408_v19 = vmax.f32 %v2274_v2, 0.0  ;;  %v2424_v21 = vmax.f32 %v2354_v43, 0.0  ;;  %v2289_v25 = vadd.f32 %v2909_v8, %v4170_v3  ;;  %v2369_v20 = vadd.f32 %v2933_v59, %v2144_v61  ;;  %v4527_v61 = vld [vmem:[#allocation18_spill] sm:$0xff]  ;;  %v4528_v2 = vld [vmem:[#allocation15_spill] sm:$0xff] }
 0x255   : > { %v2283_v54 = vpop.f32.mrf.mxu0  ;;  %v2363_v27 = vpop.f32.mrf.mxu1  ;;  %v2149_v3 = vadd.f32 %v4219_v14, %v1924_v12  ;;  %v2169_v33 = vadd.f32 %v4527_v61, %v1944_v42 }
 0x256   : > { %2440 = vst [vmem:[%s4252_s30 + $0x30] sm:$0xff] %v2408_v19  ;;  %2456 = vst [vmem:[%s4252_s30 + $0xb0] sm:$0xff] %v2424_v21  ;;  %v2411_v17 = vmax.f32 %v2289_v25, 0.0  ;;  %v2427_v52 = vmax.f32 %v2369_v20, 0.0  ;;  %v2284_v30 = vadd.f32 %v2283_v54, %v4167_v51  ;;  %v2364_v18 = vadd.f32 %v2363_v27, %v2139_v36  ;;  %v4529_v21 = vld [vmem:[#allocation20_spill] sm:$0xff] }
 0x257   : > { %v2912_v24 = vpop.f32.mrf.mxu0  ;;  %v2936_v23 = vpop.f32.mrf.mxu1  ;;  %v2164_v51 = vadd.f32 %v4231_v38, %v1939_v32 }
 0x258   : > { %2443 = vst [vmem:[%s4252_s30 + $0x48] sm:$0xff] %v2411_v17  ;;  %2459 = vst [vmem:[%s4252_s30 + $0xc8] sm:$0xff] %v2427_v52  ;;  %v2410_v4 = vmax.f32 %v2284_v30, 0.0  ;;  %v2426_v58 = vmax.f32 %v2364_v18, 0.0  ;;  %v2299_v63 = vadd.f32 %v2912_v24, %v4176_v9  ;;  %v2379_v48 = vadd.f32 %v2936_v23, %v2154_v5  ;;  %v4521_v9 = vld [vmem:[#allocation19_spill] sm:$0xff] }
 0x259   : > { %v2293_v14 = vpop.f32.mrf.mxu0  ;;  %v2373_v57 = vpop.f32.mrf.mxu1  ;;  %v2159_v41 = vadd.f32 %v4521_v9, %v1934_v1 }
 0x25a   : > { %2442 = vst [vmem:[%s4252_s30 + $0x40] sm:$0xff] %v2410_v4  ;;  %2458 = vst [vmem:[%s4252_s30 + $0xc0] sm:$0xff] %v2426_v58  ;;  %v2413_v34 = vmax.f32 %v2299_v63, 0.0  ;;  %v2429_v49 = vmax.f32 %v2379_v48, 0.0  ;;  %v2294_v26 = vadd.f32 %v2293_v14, %v4520_v16  ;;  %v2374_v56 = vadd.f32 %v2373_v57, %v2149_v3 }
 0x25b   : > { %v2915_v38 = vpop.f32.mrf.mxu0  ;;  %v2939_v55 = vpop.f32.mrf.mxu1 }
 0x25c   : > { %2445 = vst [vmem:[%s4252_s30 + $0x58] sm:$0xff] %v2413_v34  ;;  %2461 = vst [vmem:[%s4252_s30 + $0xd8] sm:$0xff] %v2429_v49  ;;  %v2412_v10 = vmax.f32 %v2294_v26, 0.0  ;;  %v2428_v60 = vmax.f32 %v2374_v56, 0.0  ;;  %v2309_v29 = vadd.f32 %v2915_v38, %v4524_v45  ;;  %v2389_v46 = vadd.f32 %v2939_v55, %v2164_v51 }
 0x25d   : > { %v2303_v15 = vpop.f32.mrf.mxu0  ;;  %v2383_v40 = vpop.f32.mrf.mxu1 }
 0x25e   : > { %2444 = vst [vmem:[%s4252_s30 + $0x50] sm:$0xff] %v2412_v10  ;;  %2460 = vst [vmem:[%s4252_s30 + $0xd0] sm:$0xff] %v2428_v60  ;;  %v2415_v44 = vmax.f32 %v2309_v29, 0.0  ;;  %v2431_v37 = vmax.f32 %v2389_v46, 0.0  ;;  %v2304_v39 = vadd.f32 %v2303_v15, %v4526_v7  ;;  %v2384_v11 = vadd.f32 %v2383_v40, %v2159_v41 }
 0x25f   : > { %v2918_v31 = vpop.f32.mrf.mxu0  ;;  %v2942_v47 = vpop.f32.mrf.mxu1 }
 0x260   : > { %2447 = vst [vmem:[%s4252_s30 + $0x68] sm:$0xff] %v2415_v44  ;;  %2463 = vst [vmem:[%s4252_s30 + $0xe8] sm:$0xff] %v2431_v37  ;;  %v2414_v6 = vmax.f32 %v2304_v39, 0.0  ;;  %v2430_v50 = vmax.f32 %v2384_v11, 0.0  ;;  %v2319_v43 = vadd.f32 %v2918_v31, %v4528_v2  ;;  %v2399_v36 = vadd.f32 %v2942_v47, %v2174_v22 }
 0x261   : > { %v2313_v12 = vpop.f32.mrf.mxu0  ;;  %v2393_v8 = vpop.f32.mrf.mxu1 }
 0x262   : > { %2446 = vst [vmem:[%s4252_s30 + $0x60] sm:$0xff] %v2414_v6  ;;  %2462 = vst [vmem:[%s4252_s30 + $0xe0] sm:$0xff] %v2430_v50  ;;  %v2417_v59 = vmax.f32 %v2319_v43, 0.0  ;;  %v2433_v19 = vmax.f32 %v2399_v36, 0.0  ;;  %v2314_v25 = vadd.f32 %v2313_v12, %v4529_v21  ;;  %v2394_v20 = vadd.f32 %v2393_v8, %v2169_v33 }
 0x264   : > { %2449 = vst [vmem:[%s4252_s30 + $0x78] sm:$0xff] %v2417_v59  ;;  %2465 = vst [vmem:[%s4252_s30 + $0xf8] sm:$0xff] %v2433_v19  ;;  %v2416_v5 = vmax.f32 %v2314_v25, 0.0  ;;  %v2432_v32 = vmax.f32 %v2394_v20, 0.0 }
 0x266   : > { %2448 = vst [vmem:[%s4252_s30 + $0x70] sm:$0xff] %v2416_v5  ;;  %2464 = vst [vmem:[%s4252_s30 + $0xf0] sm:$0xff] %v2432_v32 }
 0x267   : > { %3123 = shalt.err (!%p3120_p4)
}
 0x268   : > { %s3124_s19 = scalar_lea.hbm %s4333_s6, 4096  ;;  %s3128_s20 = scalar_lea.hbm %s4390_s3, 8192 }
 0x269   : > { %p3125_p6 = scmp.ne.s32.totalorder %s4333_s6, %s3124_s19  ;;  %p3129_p0 = scmp.lt.s32.totalorder %s4333_s6, %s4390_s3 }
 0x26a   : > { %p3130_p3 = scmp.lt.s32.totalorder %s3128_s20, %s3124_s19 }
 0x26b   : > { %p3126_p9 = pnand %p3125_p6, %p3310_p13 }
 0x26c   : > { %p3131_p1 = por %p3130_p3, %p3129_p0 }
 0x26d   : > { %p3127_p12 = pneg %p3126_p9 }
 0x26f   : > { %p3132_p8 = pnand %p3131_p1, %p3127_p12 }
 0x271   : > { %3135 = shalt.err (!%p3132_p8)
}
 0x272   : > { %s3202_s30 = smov 128   ;;  %s3203_s4 = smov 8  }
 0x273   : > { %2984 = dma.vmem_to_hbm [thread:$0]  (%p3310_p13), %s4335_s26, 4096, %s4333_s6, %s2467_s15, %s3202_s30, %s3202_s30, %s3203_s4  }
 0x274 PF: > { %s2499_s27 = sand.u32 1, %s3174_s12   ;;  %p4530_p11 = scmp.ne.s32.totalorder %s4436_s23, 0 }
 0x275   : > { %s2500_s5 = scalar_lea.sflag [#allocation5], %s2499_s27 }
 0x276   : > { %p2995_p2 = pnand %p2611_p10, %p4530_p11 }
 0x278   : > { %p2996_p5 = pneg %p2995_p2 }
 0x27a   : > { %3169 = dma.done.wait (%p2996_p5), %s2500_s5, 4096  }
 0x27b   : > { %3171 = vsyncadd (%p2996_p5), %s2500_s5, 4294963200  ;;  %s20_s17 = sadd.s32 1, %s3194_s17   ;;  %s4531_s12 = smov %s3178_s13 }
 0x27c   : > { %p17_p7 = scmp.ge.s32.totalorder %s20_s17, 4   ;;  %s4532_s13 = smov %s3182_s14 }
 0x27d   : > { %s4533_s14 = smov %s3319_s18  ;;  %s4534_s15 = smov %s3190_s16 }
 0x27e   : > { %s4535_s16 = smov %s4537_s28  ;;  %19 = sbr.rel (!%p17_p7) target bundleno = 7 (0x7), region = 92 }
 0x283   :  { %2505 = vsyncpa [#allocation4], 1 }
 0x284   :  { %2507 = vsyncpa [#allocation4 + $0x1], 1 }
 0x285   :  { %2508 = vsyncpa [#allocation7], 1 }
 0x286   :  { %2509 = vsyncpa [#allocation5], 1 }
 0x287   :  { %2511 = vsyncpa [#allocation5 + $0x1], 1 }

</bundles_post_ra>
